<compile_context>
chip_gen: v5e
topology: v5e:2x2
jax: 0.10.0
libtpu: 0.0.40
codegen_flags: <defaults>
</compile_context>

<pallas_src>
import jax
import jax.numpy as jnp
from jax.experimental import pallas as pl
from jax.experimental.pallas import tpu as pltpu


_NUM_CLASSES = 2      # fc2 output width in the PyTorch module
_LANE_PAD = 128       # fc2 output padded to a lane-dense width for unmasked vst
_TM_MAX = 512         # rows per grid step: ~85% of HBM roofline, ~12 MiB VMEM


# ----------------------------- Pallas kernel -------------------------------

def _discriminator_kernel(x_ref, w1_ref, b1_ref, w2_ref, b2_ref, o_ref):
    # x_ref:  (tm, 2048) f32     w1_ref: (2048, 256) bf16   b1_ref: (1, 256) f32
    # w2_ref: (256, 128)  bf16   b2_ref: (1, 128)    f32    o_ref:  (tm, 128) f32
    x_bf16 = x_ref[...].astype(jnp.bfloat16)                 # in-kernel cast
    h = jnp.dot(x_bf16, w1_ref[...], preferred_element_type=jnp.float32)
    h = h + b1_ref[...]
    h = jnp.maximum(h, 0.2 * h)                              # LeakyReLU(0.2)
    o = jnp.dot(h.astype(jnp.bfloat16), w2_ref[...],
                preferred_element_type=jnp.float32)
    o = o + b2_ref[...]
    o_ref[...] = jnp.maximum(o, 0.2 * o)                     # LeakyReLU(0.2)


# ------------------------------ tiling logic --------------------------------

def _ceil_to(v, m):
    return -(-v // m) * m


def _row_tiling(n_rows):
    """Pick (tile_rows, padded_rows).

    Tiles are multiples of 16, capped at _TM_MAX, and large batches always get
    >= 2 grid steps (both v7x TensorCores / megacore) with minimal padding.
    """
    mp_min = _ceil_to(max(n_rows, 1), 16)
    n_tiles = max(1, -(-mp_min // _TM_MAX))
    if n_tiles == 1 and mp_min >= 64:
        n_tiles = 2
    tm = _ceil_to(-(-mp_min // n_tiles), 16)
    return tm, n_tiles * tm


# ----------------------- one-time parameter reformat -------------------------

def prepare_params(params):
    """Reformat PyTorch-layout params into kernel layout.

    Call this ONCE, outside the jitted hot path, so the transpose / bf16 cast /
    lane-pad never hits HBM per forward call.
    """
    w1, b1, w2, b2 = params          # (256,2048), (256,), (2,256), (2,)
    H = w1.shape[0]
    C = w2.shape[0]
    w1_mat = jnp.transpose(w1).astype(jnp.bfloat16)                        # (2048, 256)
    b1_row = b1.reshape(1, H).astype(jnp.float32)                          # (1, 256)
    w2_mat = (jnp.zeros((H, _LANE_PAD), jnp.float32)
              .at[:, :C].set(jnp.transpose(w2))
              .astype(jnp.bfloat16))                                       # (256, 128)
    b2_row = jnp.zeros((1, _LANE_PAD), jnp.float32).at[:, :C].set(b2)      # (1, 128)
    return (w1_mat, b1_row, w2_mat, b2_row)


# ------------------------------- forward ------------------------------------

def feature_discriminator_forward(x, kernel_params):
    """Feature_discriminator forward. x: (N, 2048) f32 -> (N, 2) f32.

    `kernel_params` must come from prepare_params(...).
    """
    w1_mat, b1_row, w2_mat, b2_row = kernel_params
    N, K = x.shape
    H = w1_mat.shape[1]              # 256
    CP = w2_mat.shape[1]             # 128 (lane-dense padded fc2 width)

    tm, Mp = _row_tiling(N)
    xp = x if Mp == N else jnp.pad(x, ((0, Mp - N), (0, 0)))   # ragged-tail only

    flops = 2 * Mp * K * H + 2 * Mp * H * CP
    bytes_accessed = (Mp * K * 4                # x, f32, single pass
                      + K * H * 2               # w1 bf16
                      + H * CP * 2              # w2 bf16
                      + H * 4 + CP * 4          # biases
                      + Mp * CP * 4)            # padded output

    out = pl.pallas_call(
        _discriminator_kernel,
        out_shape=jax.ShapeDtypeStruct((Mp, CP), jnp.float32),
        grid=(Mp // tm,),
        in_specs=[
            pl.BlockSpec((tm, K), lambda i: (i, 0)),
            pl.BlockSpec((K, H), lambda i: (0, 0)),
            pl.BlockSpec((1, H), lambda i: (0, 0)),
            pl.BlockSpec((H, CP), lambda i: (0, 0)),
            pl.BlockSpec((1, CP), lambda i: (0, 0)),
        ],
        out_specs=pl.BlockSpec((tm, CP), lambda i: (i, 0)),
        compiler_params=pltpu.CompilerParams(
            dimension_semantics=("parallel",),
            vmem_limit_bytes=48 * 1024 * 1024,
        ),
        cost_estimate=pl.CostEstimate(flops=flops, transcendentals=0,
                                      bytes_accessed=bytes_accessed),
    )(xp, w1_mat, b1_row, w2_mat, b2_row)

    return out[:N, :_NUM_CLASSES]


# --------------------------- parameter init ---------------------------------

def init_params(key):
    k1, k2, k3, k4 = jax.random.split(key, 4)
    w1 = jax.random.normal(k1, (256, 2048), jnp.float32) / jnp.sqrt(2048.0)
    b1 = 0.1 * jax.random.normal(k2, (256,), jnp.float32)
    w2 = jax.random.normal(k3, (2, 256), jnp.float32) / jnp.sqrt(256.0)
    b2 = 0.1 * jax.random.normal(k4, (2,), jnp.float32)
    return (w1, b1, w2, b2)


# --------------------------- pure-JAX reference ------------------------------

def reference_forward(x, params):
    w1, b1, w2, b2 = params
    h = x @ w1.T + b1
    h = jnp.where(h > 0, h, 0.2 * h)
    o = h @ w2.T + b2
    return jnp.where(o > 0, o, 0.2 * o)


# --------------------------------- main --------------------------------------

if __name__ == "__main__":
    key = jax.random.PRNGKey(0)
    kx, kp = jax.random.split(key)

    # Feature_discriminator expects 2048-dim features; use a small batch of 8.
    x = jax.random.normal(kx, (8, 2048), jnp.float32)
    params = init_params(kp)                 # PyTorch layout
    kparams = prepare_params(params)         # one-time, outside the jitted path

    fwd = jax.jit(feature_discriminator_forward)
    out = jax.block_until_ready(fwd(x, kparams))

    assert out.shape == (8, 2), out.shape
    assert bool(jnp.all(jnp.isfinite(out)))

    # bf16 MXU inputs (f32 accumulation) => O(1e-2) deviation from f32 reference.
    ref = reference_forward(x, params)
    max_err = float(jnp.max(jnp.abs(out - ref)))
    assert jnp.allclose(out, ref, atol=5e-2, rtol=5e-2), max_err

    print("KERNEL_OK")
</pallas_src>

<mosaic_0001>
module attributes {stable_mosaic.version = 11 : i64} {
  func.func @_discriminator_kernel(%arg0: i32, %arg1: memref<16x2048xf32, #tpu.memory_space<vmem>>, %arg2: memref<2048x256xbf16, #tpu.memory_space<vmem>>, %arg3: memref<1x256xf32, #tpu.memory_space<vmem>>, %arg4: memref<256x128xbf16, #tpu.memory_space<vmem>>, %arg5: memref<1x128xf32, #tpu.memory_space<vmem>>, %arg6: memref<16x128xf32, #tpu.memory_space<vmem>>) attributes {dimension_semantics = [#tpu.dimension_semantics<parallel>], iteration_bounds = array<i64: 1>, scalar_prefetch = 0 : i64, scratch_operands = 0 : i64, tpu.core_type = #tpu.core_type<tc>, window_params = [{transform_indices = @transform_0, window_bounds = array<i64: 16, 2048>}, {pipeline_mode = #tpu.pipeline_mode<synchronous>, transform_indices = @transform_1, window_bounds = array<i64: 2048, 256>}, {pipeline_mode = #tpu.pipeline_mode<synchronous>, transform_indices = @transform_2, window_bounds = array<i64: 1, 256>}, {pipeline_mode = #tpu.pipeline_mode<synchronous>, transform_indices = @transform_3, window_bounds = array<i64: 256, 128>}, {pipeline_mode = #tpu.pipeline_mode<synchronous>, transform_indices = @transform_4, window_bounds = array<i64: 1, 128>}, {transform_indices = @transform_5, window_bounds = array<i64: 16, 128>}]} {
    %c0 = arith.constant 0 : index
    %c0_0 = arith.constant 0 : index
    %0 = vector.load %arg1[%c0, %c0_0] : memref<16x2048xf32, #tpu.memory_space<vmem>>, vector<16x2048xf32>
    %1 = arith.truncf %0 : vector<16x2048xf32> to vector<16x2048xbf16>
    %c0_1 = arith.constant 0 : index
    %c0_2 = arith.constant 0 : index
    %2 = vector.load %arg2[%c0_1, %c0_2] : memref<2048x256xbf16, #tpu.memory_space<vmem>>, vector<2048x256xbf16>
    %cst = arith.constant dense<0.000000e+00> : vector<16x256xf32>
    %3 = tpu.matmul %1, %2, %cst {dimension_numbers = #tpu.dot_dimension_numbers<[1], [0], [0], [1], [0, 0, 1, 1], [], []>} : vector<16x2048xbf16>, vector<2048x256xbf16>, vector<16x256xf32> -> vector<16x256xf32>
    %c0_3 = arith.constant 0 : index
    %c0_4 = arith.constant 0 : index
    %4 = vector.load %arg3[%c0_3, %c0_4] : memref<1x256xf32, #tpu.memory_space<vmem>>, vector<1x256xf32>
    %5 = vector.broadcast %4 : vector<1x256xf32> to vector<16x256xf32>
    %6 = arith.addf %3, %5 : vector<16x256xf32>
    %cst_5 = arith.constant 2.000000e-01 : f32
    %7 = vector.broadcast %cst_5 : f32 to vector<16x256xf32>
    %8 = arith.mulf %7, %6 : vector<16x256xf32>
    %9 = arith.maximumf %6, %8 : vector<16x256xf32>
    %10 = arith.truncf %9 : vector<16x256xf32> to vector<16x256xbf16>
    %c0_6 = arith.constant 0 : index
    %c0_7 = arith.constant 0 : index
    %11 = vector.load %arg4[%c0_6, %c0_7] : memref<256x128xbf16, #tpu.memory_space<vmem>>, vector<256x128xbf16>
    %cst_8 = arith.constant dense<0.000000e+00> : vector<16x128xf32>
    %12 = tpu.matmul %10, %11, %cst_8 {dimension_numbers = #tpu.dot_dimension_numbers<[1], [0], [0], [1], [0, 0, 1, 1], [], []>} : vector<16x256xbf16>, vector<256x128xbf16>, vector<16x128xf32> -> vector<16x128xf32>
    %c0_9 = arith.constant 0 : index
    %c0_10 = arith.constant 0 : index
    %13 = vector.load %arg5[%c0_9, %c0_10] : memref<1x128xf32, #tpu.memory_space<vmem>>, vector<1x128xf32>
    %14 = vector.broadcast %13 : vector<1x128xf32> to vector<16x128xf32>
    %15 = arith.addf %12, %14 : vector<16x128xf32>
    %cst_11 = arith.constant 2.000000e-01 : f32
    %16 = vector.broadcast %cst_11 : f32 to vector<16x128xf32>
    %17 = arith.mulf %16, %15 : vector<16x128xf32>
    %18 = arith.maximumf %15, %17 : vector<16x128xf32>
    %c0_12 = arith.constant 0 : index
    %c0_13 = arith.constant 0 : index
    %19 = vector.load %arg6[%c0_12, %c0_13] : memref<16x128xf32, #tpu.memory_space<vmem>>, vector<16x128xf32>
    tpu.vector_store %arg6[%c0_12, %c0_13], %18 {strides = array<i32>} : memref<16x128xf32, #tpu.memory_space<vmem>>, vector<16x128xf32>,
    return
  }
  func.func @transform_0(%arg0: i32) -> (i32, i32) {
    %c0_i32 = arith.constant 0 : i32
    %c0_i32_0 = arith.constant 0 : i32
    return %arg0, %c0_i32 : i32, i32
  }
  func.func @transform_1(%arg0: i32) -> (i32, i32) {
    %c0_i32 = arith.constant 0 : i32
    %c0_i32_0 = arith.constant 0 : i32
    %c0_i32_1 = arith.constant 0 : i32
    return %c0_i32, %c0_i32_0 : i32, i32
  }
  func.func @transform_2(%arg0: i32) -> (i32, i32) {
    %c0_i32 = arith.constant 0 : i32
    %c0_i32_0 = arith.constant 0 : i32
    %c0_i32_1 = arith.constant 0 : i32
    return %c0_i32, %c0_i32_0 : i32, i32
  }
  func.func @transform_3(%arg0: i32) -> (i32, i32) {
    %c0_i32 = arith.constant 0 : i32
    %c0_i32_0 = arith.constant 0 : i32
    %c0_i32_1 = arith.constant 0 : i32
    return %c0_i32, %c0_i32_0 : i32, i32
  }
  func.func @transform_4(%arg0: i32) -> (i32, i32) {
    %c0_i32 = arith.constant 0 : i32
    %c0_i32_0 = arith.constant 0 : i32
    %c0_i32_1 = arith.constant 0 : i32
    return %c0_i32, %c0_i32_0 : i32, i32
  }
  func.func @transform_5(%arg0: i32) -> (i32, i32) {
    %c0_i32 = arith.constant 0 : i32
    %c0_i32_0 = arith.constant 0 : i32
    return %arg0, %c0_i32 : i32, i32
  }
}

</mosaic_0001>

<bundles_post_ra>
// kernel: feature_discriminator_forward.1
= control target key start
LH: loop header
LB: loop body
LE: loop exit
PB: predicated region body
PF: predicated region fallthrough
CT: control target
= control target key end

     0   :  { %10 = vsyncpa [#allocation3], 0  ;;  %s3645_s21 = smov [#allocation2]   ;;  %s3646_s23 = smov 128   ;;  %s3948_s0 = inlined_call_operand.vmem [shape: f32[16,2048], index: 0, kind: input, shape index: {}]   ;;  %s3949_s1 = inlined_call_operand.hbm [shape: bf16[2048,256], index: 1, kind: input, shape index: {}]   ;;  %s3950_s2 = inlined_call_operand.vmem [shape: f32[1,256], index: 2, kind: input, shape index: {}]   ;;  %s3951_s3 = inlined_call_operand.vmem [shape: bf16[256,128], index: 3, kind: input, shape index: {}]   ;;  %s3952_s4 = inlined_call_operand.vmem [shape: f32[1,128], index: 4, kind: input, shape index: {}]   ;;  %s3953_s5 = inlined_call_operand.vmem [shape: f32[16,128], index: 5, kind: output, shape index: {}]  }
   0x1   :  { %s17_s20 = sshll.u32 %s3949_s1, 4  ;;  %s19_s22 = sshll.u32 %s3645_s21, 4  ;;  %s18_s20 = int_to_ptr.hbm [resolvable:$true] %s17_s20  ;;  %s20_s22 = int_to_ptr.vmem [resolvable:$true] %s19_s22 }
   0x2   :  { %s3647_s24 = smov 8  }
   0x3   :  { %25 = dma.hbm_to_vmem [thread:$0]  %s18_s20, 32768, %s20_s22, [#allocation3], %s3646_s23, %s3646_s23, %s3647_s24  }
   0x4   :  { %3643 = dma.done.wait [#allocation3], 32768  }
   0x5   :  { %3644 = vsyncadd [#allocation3], 4294934528  ;;  %v2313_v0 = vld [vmem:[#allocation2 + $0x70] sm:$0xf]  ;;  %v3358_v1 = vld [vmem:[#allocation2 + $0x74] sm:$0xf0] }
   0x6   :  { %v2377_v2 = vld [vmem:[#allocation2 + $0xf0] sm:$0xf]  ;;  %v2314_v3 = vor.u32 %v3358_v1, %v2313_v0  ;;  %v3374_v4 = vld [vmem:[#allocation2 + $0xf4] sm:$0xf0]  ;;  %v2305_v11 = vld [vmem:[#allocation2 + $0x60] sm:$0xf] }
   0x7   :  { %v2441_v5 = vld [vmem:[#allocation2 + $0x170] sm:$0xf]  ;;  %v3390_v6 = vld [vmem:[#allocation2 + $0x174] sm:$0xf0]  ;;  %v2378_v7 = vor.u32 %v3374_v4, %v2377_v2  ;;  %v3356_v13 = vld [vmem:[#allocation2 + $0x64] sm:$0xf0] }
   0x8   :  { %v2442_v8 = vor.u32 %v3390_v6, %v2441_v5  ;;  %v2505_v9 = vld [vmem:[#allocation2 + $0x1f0] sm:$0xf]  ;;  %v3406_v10 = vld [vmem:[#allocation2 + $0x1f4] sm:$0xf0]  ;;  %1626 = vmatpush.bf16.msra.mxu0 %v2314_v3  ;;  %v2369_v14 = vld [vmem:[#allocation2 + $0xe0] sm:$0xf]  ;;  %v2306_v16 = vor.u32 %v3356_v13, %v2305_v11 }
   0x9   :  { %v2506_v12 = vor.u32 %v3406_v10, %v2505_v9  ;;  %v3372_v15 = vld [vmem:[#allocation2 + $0xe4] sm:$0xf0]  ;;  %1640 = vmatpush.bf16.msra.mxu1 %v2378_v7  ;;  %v2433_v18 = vld [vmem:[#allocation2 + $0x160] sm:$0xf]  ;;  %v2297_v23 = vld [vmem:[#allocation2 + $0x50] sm:$0xf] }
   0xa   :  { %1654 = vmatpush.bf16.msra.mxu2 %v2442_v8  ;;  %v2370_v17 = vor.u32 %v3372_v15, %v2369_v14  ;;  %v3388_v19 = vld [vmem:[#allocation2 + $0x164] sm:$0xf0]  ;;  %v2497_v20 = vld [vmem:[#allocation2 + $0x1e0] sm:$0xf]  ;;  %v3354_v24 = vld [vmem:[#allocation2 + $0x54] sm:$0xf0] }
   0xb   :  { %1668 = vmatpush.bf16.msra.mxu3 %v2506_v12  ;;  %v2434_v21 = vor.u32 %v3388_v19, %v2433_v18  ;;  %v3404_v22 = vld [vmem:[#allocation2 + $0x1e4] sm:$0xf0]  ;;  %v2361_v26 = vld [vmem:[#allocation2 + $0xd0] sm:$0xf]  ;;  %v3370_v27 = vld [vmem:[#allocation2 + $0xd4] sm:$0xf0]  ;;  %v2298_v29 = vor.u32 %v3354_v24, %v2297_v23 }
   0xc   :  { %v2498_v25 = vor.u32 %v3404_v22, %v2497_v20  ;;  %v2425_v28 = vld [vmem:[#allocation2 + $0x150] sm:$0xf]  ;;  %1627 = vmatpush.bf16.msra.mxu0 %v2306_v16  ;;  %v3386_v30 = vld [vmem:[#allocation2 + $0x154] sm:$0xf0]  ;;  %v2362_v33 = vor.u32 %v3370_v27, %v2361_v26  ;;  %v2289_v35 = vld [vmem:[#allocation2 + $0x40] sm:$0xf] }
   0xd   :  { %v2489_v31 = vld [vmem:[#allocation2 + $0x1d0] sm:$0xf]  ;;  %v3402_v32 = vld [vmem:[#allocation2 + $0x1d4] sm:$0xf0]  ;;  %1641 = vmatpush.bf16.msra.mxu1 %v2370_v17  ;;  %v2426_v34 = vor.u32 %v3386_v30, %v2425_v28  ;;  %v3352_v36 = vld [vmem:[#allocation2 + $0x44] sm:$0xf0] }
   0xe   :  { %1655 = vmatpush.bf16.msra.mxu2 %v2434_v21  ;;  %v2353_v37 = vld [vmem:[#allocation2 + $0xc0] sm:$0xf]  ;;  %v2490_v38 = vor.u32 %v3402_v32, %v2489_v31  ;;  %v3368_v39 = vld [vmem:[#allocation2 + $0xc4] sm:$0xf0]  ;;  %v2290_v44 = vor.u32 %v3352_v36, %v2289_v35  ;;  %v2281_v47 = vld [vmem:[#allocation2 + $0x30] sm:$0xf] }
   0xf   :  { %1669 = vmatpush.bf16.msra.mxu3 %v2498_v25  ;;  %v2417_v40 = vld [vmem:[#allocation2 + $0x140] sm:$0xf]  ;;  %v3384_v41 = vld [vmem:[#allocation2 + $0x144] sm:$0xf0]  ;;  %v2354_v45 = vor.u32 %v3368_v39, %v2353_v37  ;;  %v3350_v48 = vld [vmem:[#allocation2 + $0x34] sm:$0xf0] }
  0x10   :  { %v2481_v42 = vld [vmem:[#allocation2 + $0x1c0] sm:$0xf]  ;;  %v3400_v43 = vld [vmem:[#allocation2 + $0x1c4] sm:$0xf0]  ;;  %1628 = vmatpush.bf16.msra.mxu0 %v2298_v29  ;;  %v2418_v46 = vor.u32 %v3384_v41, %v2417_v40  ;;  %v2345_v49 = vld [vmem:[#allocation2 + $0xb0] sm:$0xf]  ;;  %v2282_v56 = vor.u32 %v3350_v48, %v2281_v47 }
  0x11   :  { %1642 = vmatpush.bf16.msra.mxu1 %v2362_v33  ;;  %v2482_v50 = vor.u32 %v3400_v43, %v2481_v42  ;;  %v3366_v51 = vld [vmem:[#allocation2 + $0xb4] sm:$0xf0]  ;;  %v2409_v52 = vld [vmem:[#allocation2 + $0x130] sm:$0xf]  ;;  %v2273_v59 = vld [vmem:[#allocation2 + $0x20] sm:$0xf] }
  0x12   :  { %1656 = vmatpush.bf16.msra.mxu2 %v2426_v34  ;;  %v3382_v53 = vld [vmem:[#allocation2 + $0x134] sm:$0xf0]  ;;  %v2473_v54 = vld [vmem:[#allocation2 + $0x1b0] sm:$0xf]  ;;  %v2346_v57 = vor.u32 %v3366_v51, %v2345_v49  ;;  %v3348_v60 = vld [vmem:[#allocation2 + $0x24] sm:$0xf0] }
  0x13   :  { %1670 = vmatpush.bf16.msra.mxu3 %v2490_v38  ;;  %v3398_v55 = vld [vmem:[#allocation2 + $0x1b4] sm:$0xf0]  ;;  %v2410_v58 = vor.u32 %v3382_v53, %v2409_v52  ;;  %v2337_v61 = vld [vmem:[#allocation2 + $0xa0] sm:$0xf]  ;;  %v3364_v63 = vld [vmem:[#allocation2 + $0xa4] sm:$0xf0]  ;;  %v2274_v4 = vor.u32 %v3348_v60, %v2273_v59 }
  0x14   :  { %1629 = vmatpush.bf16.msra.mxu0 %v2290_v44  ;;  %v2474_v62 = vor.u32 %v3398_v55, %v2473_v54  ;;  %v2401_v0 = vld [vmem:[#allocation2 + $0x120] sm:$0xf]  ;;  %v3380_v1 = vld [vmem:[#allocation2 + $0x124] sm:$0xf0]  ;;  %v2338_v5 = vor.u32 %v3364_v63, %v2337_v61  ;;  %v2265_v7 = vld [vmem:[#allocation2 + $0x10] sm:$0xf] }
  0x15   :  { %1643 = vmatpush.bf16.msra.mxu1 %v2354_v45  ;;  %v2465_v2 = vld [vmem:[#allocation2 + $0x1a0] sm:$0xf]  ;;  %v3396_v3 = vld [vmem:[#allocation2 + $0x1a4] sm:$0xf0]  ;;  %v2402_v6 = vor.u32 %v3380_v1, %v2401_v0  ;;  %v3346_v8 = vld [vmem:[#allocation2 + $0x14] sm:$0xf0] }
  0x16   :  { %1657 = vmatpush.bf16.msra.mxu2 %v2418_v46  ;;  %v2329_v9 = vld [vmem:[#allocation2 + $0x90] sm:$0xf]  ;;  %v2466_v10 = vor.u32 %v3396_v3, %v2465_v2  ;;  %v3362_v11 = vld [vmem:[#allocation2 + $0x94] sm:$0xf0]  ;;  %v2266_v16 = vor.u32 %v3346_v8, %v2265_v7  ;;  %v2257_v17 = vld [vmem:[#allocation2] sm:$0xf] }
  0x17   :  { %1671 = vmatpush.bf16.msra.mxu3 %v2482_v50  ;;  %v2393_v12 = vld [vmem:[#allocation2 + $0x110] sm:$0xf]  ;;  %v3378_v13 = vld [vmem:[#allocation2 + $0x114] sm:$0xf0]  ;;  %v3344_v18 = vld [vmem:[#allocation2 + $0x4] sm:$0xf0]  ;;  %v2330_v19 = vor.u32 %v3362_v11, %v2329_v9 }
  0x18   :  { %1630 = vmatpush.bf16.msra.mxu0 %v2282_v56  ;;  %v2457_v14 = vld [vmem:[#allocation2 + $0x190] sm:$0xf]  ;;  %v3394_v15 = vld [vmem:[#allocation2 + $0x194] sm:$0xf0]  ;;  %v2394_v20 = vor.u32 %v3378_v13, %v2393_v12  ;;  %v2321_v21 = vld [vmem:[#allocation2 + $0x80] sm:$0xf]  ;;  %v2258_v31 = vor.u32 %v3344_v18, %v2257_v17 }
  0x19   :  { %1644 = vmatpush.bf16.msra.mxu1 %v2346_v57  ;;  %v3360_v22 = vld [vmem:[#allocation2 + $0x84] sm:$0xf0]  ;;  %v2385_v23 = vld [vmem:[#allocation2 + $0x100] sm:$0xf]  ;;  %v2458_v24 = vor.u32 %v3394_v15, %v2457_v14  ;;  %v2569_v28 = vld [vmem:[#allocation2 + $0x270] sm:$0xf] }
  0x1a   :  { %1658 = vmatpush.bf16.msra.mxu2 %v2410_v58  ;;  %v3376_v25 = vld [vmem:[#allocation2 + $0x104] sm:$0xf0]  ;;  %v2449_v26 = vld [vmem:[#allocation2 + $0x180] sm:$0xf]  ;;  %v3422_v29 = vld [vmem:[#allocation2 + $0x274] sm:$0xf0]  ;;  %v2322_v35 = vor.u32 %v3360_v22, %v2321_v21 }
  0x1b   :  { %1672 = vmatpush.bf16.msra.mxu3 %v2474_v62  ;;  %v3392_v27 = vld [vmem:[#allocation2 + $0x184] sm:$0xf0]  ;;  %v2633_v30 = vld [vmem:[#allocation2 + $0x2f0] sm:$0xf]  ;;  %v3438_v32 = vld [vmem:[#allocation2 + $0x2f4] sm:$0xf0]  ;;  %v2386_v36 = vor.u32 %v3376_v25, %v2385_v23  ;;  %v2570_v40 = vor.u32 %v3422_v29, %v2569_v28 }
  0x1c   :  { %1631 = vmatpush.bf16.msra.mxu0 %v2274_v4  ;;  %v2697_v33 = vld [vmem:[#allocation2 + $0x370] sm:$0xf]  ;;  %v3454_v34 = vld [vmem:[#allocation2 + $0x374] sm:$0xf0]  ;;  %v2450_v39 = vor.u32 %v3392_v27, %v2449_v26  ;;  %v2561_v41 = vld [vmem:[#allocation2 + $0x260] sm:$0xf]  ;;  %v2634_v43 = vor.u32 %v3438_v32, %v2633_v30 }
  0x1d   :  { %1645 = vmatpush.bf16.msra.mxu1 %v2338_v5  ;;  %v2761_v37 = vld [vmem:[#allocation2 + $0x3f0] sm:$0xf]  ;;  %v3470_v38 = vld [vmem:[#allocation2 + $0x3f4] sm:$0xf0]  ;;  %v3420_v42 = vld [vmem:[#allocation2 + $0x264] sm:$0xf0]  ;;  %v2698_v44 = vor.u32 %v3454_v34, %v2697_v33 }
  0x1e   :  { %1659 = vmatpush.bf16.msra.mxu2 %v2402_v6  ;;  %v2625_v45 = vld [vmem:[#allocation2 + $0x2e0] sm:$0xf]  ;;  %v3436_v46 = vld [vmem:[#allocation2 + $0x2e4] sm:$0xf0]  ;;  %v2762_v48 = vor.u32 %v3470_v38, %v2761_v37  ;;  %v38_v54 = vld [vmem:[%s3948_s0 + $0x10] sm:$0xff]  ;;  %v2562_v55 = vor.u32 %v3420_v42, %v2561_v41 }
  0x1f   :  { %1673 = vmatpush.bf16.msra.mxu3 %v2466_v10  ;;  %v2689_v47 = vld [vmem:[#allocation2 + $0x360] sm:$0xf]  ;;  %v3452_v49 = vld [vmem:[#allocation2 + $0x364] sm:$0xf0]  ;;  %v2553_v56 = vld [vmem:[#allocation2 + $0x250] sm:$0xf]  ;;  %v2626_v60 = vor.u32 %v3436_v46, %v2625_v45 }
  0x20   :  { %1632 = vmatpush.bf16.msra.mxu0 %v2266_v16  ;;  %v2753_v50 = vld [vmem:[#allocation2 + $0x3e0] sm:$0xf]  ;;  %v3468_v51 = vld [vmem:[#allocation2 + $0x3e4] sm:$0xf0]  ;;  %v3418_v57 = vld [vmem:[#allocation2 + $0x254] sm:$0xf0]  ;;  %v2690_v61 = vor.u32 %v3452_v49, %v2689_v47 }
  0x21   :  { %1646 = vmatpush.bf16.msra.mxu1 %v2330_v19  ;;  %v36_v52 = vld [vmem:[%s3948_s0] sm:$0xff]  ;;  %v54_v59 = vld [vmem:[%s3948_s0 + $0x90] sm:$0xff]  ;;  %v3434_v63 = vld [vmem:[#allocation2 + $0x2d4] sm:$0xf0]  ;;  %v2754_v2 = vor.u32 %v3468_v51, %v2753_v50  ;;  %v2554_v9 = vor.u32 %v3418_v57, %v2553_v56 }
  0x22   :  { %1660 = vmatpush.bf16.msra.mxu2 %v2394_v20  ;;  %v52_v53 = vld [vmem:[%s3948_s0 + $0x80] sm:$0xff]  ;;  %v2617_v62 = vld [vmem:[#allocation2 + $0x2d0] sm:$0xf]  ;;  %v3695_v1 = vpack.c.bf16 %v54_v59, %v38_v54  ;;  %v3450_v3 = vld [vmem:[#allocation2 + $0x354] sm:$0xf0] }
  0x23   :  { %1674 = vmatpush.bf16.msra.mxu3 %v2458_v24  ;;  %v3690_v58 = vpack.c.bf16 %v52_v53, %v36_v52  ;;  %v2681_v0 = vld [vmem:[#allocation2 + $0x350] sm:$0xf]  ;;  %v3466_v5 = vld [vmem:[#allocation2 + $0x3d4] sm:$0xf0]  ;;  %v37_v6 = vld [vmem:[%s3948_s0 + $0x8] sm:$0xff]  ;;  %v2618_v12 = vor.u32 %v3434_v63, %v2617_v62 }
  0x24   :  { %1633 = vmatpush.bf16.msra.mxu0 %v2258_v31  ;;  %v2745_v4 = vld [vmem:[#allocation2 + $0x3d0] sm:$0xf]  ;;  %v53_v7 = vld [vmem:[%s3948_s0 + $0x88] sm:$0xff]  ;;  %v39_v8 = vld [vmem:[%s3948_s0 + $0x18] sm:$0xff]  ;;  %v2682_v13 = vor.u32 %v3450_v3, %v2681_v0 }
  0x25   :  { %1647 = vmatpush.bf16.msra.mxu1 %v2322_v35  ;;  %v3708_v10 = vpack.c.bf16 %v53_v7, %v37_v6  ;;  %v55_v11 = vld [vmem:[%s3948_s0 + $0x98] sm:$0xff]  ;;  %v2545_v14 = vld [vmem:[#allocation2 + $0x240] sm:$0xf]  ;;  %v3416_v15 = vld [vmem:[#allocation2 + $0x244] sm:$0xf0]  ;;  %v2746_v18 = vor.u32 %v3466_v5, %v2745_v4 }
  0x26   :  { %1661 = vmatpush.bf16.msra.mxu2 %v2386_v36  ;;  %v2609_v16 = vld [vmem:[#allocation2 + $0x2c0] sm:$0xf]  ;;  %v3713_v17 = vpack.c.bf16 %v55_v11, %v39_v8  ;;  %v3432_v19 = vld [vmem:[#allocation2 + $0x2c4] sm:$0xf0]  ;;  %v2546_v24 = vor.u32 %v3416_v15, %v2545_v14  ;;  %v2537_v27 = vld [vmem:[#allocation2 + $0x230] sm:$0xf] }
  0x27   :  { %1675 = vmatpush.bf16.msra.mxu3 %v2450_v39  ;;  %1634 = vmatmul.bf16.vlgmr.msra.gmra.mxu0 %v3690_v58  ;;  %v2673_v20 = vld [vmem:[#allocation2 + $0x340] sm:$0xf]  ;;  %v3448_v21 = vld [vmem:[#allocation2 + $0x344] sm:$0xf0]  ;;  %v2610_v25 = vor.u32 %v3432_v19, %v2609_v16  ;;  %v3414_v28 = vld [vmem:[#allocation2 + $0x234] sm:$0xf0] }
  0x28   :  { %1682 = vmatpush.bf16.msrb.mxu0 %v2570_v40  ;;  %1648 = vmatmul.bf16.vlgmr.msra.gmra.mxu1 %v3708_v10  ;;  %v2737_v22 = vld [vmem:[#allocation2 + $0x3c0] sm:$0xf]  ;;  %v3464_v23 = vld [vmem:[#allocation2 + $0x3c4] sm:$0xf0]  ;;  %v2674_v26 = vor.u32 %v3448_v21, %v2673_v20  ;;  %v2601_v29 = vld [vmem:[#allocation2 + $0x2b0] sm:$0xf]  ;;  %v2538_v36 = vor.u32 %v3414_v28, %v2537_v27 }
  0x29   :  { %1696 = vmatpush.bf16.msrb.mxu1 %v2634_v43  ;;  %1662 = vmatmul.bf16.vlgmr.msra.gmra.mxu2 %v3695_v1  ;;  %v2738_v30 = vor.u32 %v3464_v23, %v2737_v22  ;;  %v3430_v31 = vld [vmem:[#allocation2 + $0x2b4] sm:$0xf0]  ;;  %v2665_v32 = vld [vmem:[#allocation2 + $0x330] sm:$0xf]  ;;  %v2529_v39 = vld [vmem:[#allocation2 + $0x220] sm:$0xf] }
  0x2a   :  { %1710 = vmatpush.bf16.msrb.mxu2 %v2698_v44  ;;  %1676 = vmatmul.bf16.vlgmr.msra.gmra.mxu3 %v3713_v17  ;;  %v3446_v33 = vld [vmem:[#allocation2 + $0x334] sm:$0xf0]  ;;  %v2729_v34 = vld [vmem:[#allocation2 + $0x3b0] sm:$0xf]  ;;  %v2602_v37 = vor.u32 %v3430_v31, %v2601_v29  ;;  %v3412_v40 = vld [vmem:[#allocation2 + $0x224] sm:$0xf0] }
  0x2b   :  { %1724 = vmatpush.bf16.msrb.mxu3 %v2762_v48  ;;  %v3462_v35 = vld [vmem:[#allocation2 + $0x3b4] sm:$0xf0]  ;;  %v2666_v38 = vor.u32 %v3446_v33, %v2665_v32  ;;  %v2593_v41 = vld [vmem:[#allocation2 + $0x2a0] sm:$0xf]  ;;  %v3428_v43 = vld [vmem:[#allocation2 + $0x2a4] sm:$0xf0]  ;;  %v2530_v48 = vor.u32 %v3412_v40, %v2529_v39 }
  0x2c   :  { %1683 = vmatpush.bf16.msrb.mxu0 %v2562_v55  ;;  %v2730_v42 = vor.u32 %v3462_v35, %v2729_v34  ;;  %v2657_v44 = vld [vmem:[#allocation2 + $0x320] sm:$0xf]  ;;  %v3444_v45 = vld [vmem:[#allocation2 + $0x324] sm:$0xf0]  ;;  %v2521_v49 = vld [vmem:[#allocation2 + $0x210] sm:$0xf]  ;;  %v2594_v50 = vor.u32 %v3428_v43, %v2593_v41 }
  0x2d   :  { %1697 = vmatpush.bf16.msrb.mxu1 %v2626_v60  ;;  %v2721_v46 = vld [vmem:[#allocation2 + $0x3a0] sm:$0xf]  ;;  %v3460_v47 = vld [vmem:[#allocation2 + $0x3a4] sm:$0xf0]  ;;  %v2658_v51 = vor.u32 %v3444_v45, %v2657_v44  ;;  %v3410_v52 = vld [vmem:[#allocation2 + $0x214] sm:$0xf0] }
  0x2e   :  { %1711 = vmatpush.bf16.msrb.mxu2 %v2690_v61  ;;  %v2585_v53 = vld [vmem:[#allocation2 + $0x290] sm:$0xf]  ;;  %v3426_v54 = vld [vmem:[#allocation2 + $0x294] sm:$0xf0]  ;;  %v2722_v55 = vor.u32 %v3460_v47, %v2721_v46  ;;  %v2513_v61 = vld [vmem:[#allocation2 + $0x200] sm:$0xf]  ;;  %v2522_v63 = vor.u32 %v3410_v52, %v2521_v49 }
  0x2f   :  { %1725 = vmatpush.bf16.msrb.mxu3 %v2754_v2  ;;  %v2649_v56 = vld [vmem:[#allocation2 + $0x310] sm:$0xf]  ;;  %v3442_v57 = vld [vmem:[#allocation2 + $0x314] sm:$0xf0]  ;;  %v3408_v62 = vld [vmem:[#allocation2 + $0x204] sm:$0xf0]  ;;  %v2586_v5 = vor.u32 %v3426_v54, %v2585_v53 }
  0x30   :  { %1684 = vmatpush.bf16.msrb.mxu0 %v2554_v9  ;;  %v2713_v59 = vld [vmem:[#allocation2 + $0x390] sm:$0xf]  ;;  %v3458_v60 = vld [vmem:[#allocation2 + $0x394] sm:$0xf0]  ;;  %v2577_v0 = vld [vmem:[#allocation2 + $0x280] sm:$0xf]  ;;  %v2650_v6 = vor.u32 %v3442_v57, %v2649_v56  ;;  %v2514_v19 = vor.u32 %v3408_v62, %v2513_v61 }
  0x31   :  { %1698 = vmatpush.bf16.msrb.mxu1 %v2618_v12  ;;  %v3424_v2 = vld [vmem:[#allocation2 + $0x284] sm:$0xf0]  ;;  %v2641_v3 = vld [vmem:[#allocation2 + $0x300] sm:$0xf]  ;;  %v2825_v9 = vld [vmem:[#allocation2 + $0x470] sm:$0xf]  ;;  %v2714_v11 = vor.u32 %v3458_v60, %v2713_v59 }
  0x32   :  { %1712 = vmatpush.bf16.msrb.mxu2 %v2682_v13  ;;  %v3440_v4 = vld [vmem:[#allocation2 + $0x304] sm:$0xf0]  ;;  %v2705_v7 = vld [vmem:[#allocation2 + $0x380] sm:$0xf]  ;;  %v3486_v12 = vld [vmem:[#allocation2 + $0x474] sm:$0xf0]  ;;  %v2578_v23 = vor.u32 %v3424_v2, %v2577_v0 }
  0x33   :  { %1726 = vmatpush.bf16.msrb.mxu3 %v2746_v18  ;;  %v3456_v8 = vld [vmem:[#allocation2 + $0x384] sm:$0xf0]  ;;  %v2889_v13 = vld [vmem:[#allocation2 + $0x4f0] sm:$0xf]  ;;  %v3502_v14 = vld [vmem:[#allocation2 + $0x4f4] sm:$0xf0]  ;;  %v2826_v29 = vor.u32 %v3486_v12, %v2825_v9 }
  0x34   :  { %1685 = vmatpush.bf16.msrb.mxu0 %v2546_v24  ;;  %v2953_v15 = vld [vmem:[#allocation2 + $0x570] sm:$0xf]  ;;  %v3518_v16 = vld [vmem:[#allocation2 + $0x574] sm:$0xf0]  ;;  %v40_v21 = vld [vmem:[%s3948_s0 + $0x20] sm:$0xff]  ;;  %v2642_v24 = vor.u32 %v3440_v4, %v2641_v3  ;;  %v2706_v28 = vor.u32 %v3456_v8, %v2705_v7  ;;  %v2890_v33 = vor.u32 %v3502_v14, %v2889_v13 }
  0x35   :  { %1699 = vmatpush.bf16.msrb.mxu1 %v2610_v25  ;;  %v3017_v18 = vld [vmem:[#allocation2 + $0x5f0] sm:$0xf]  ;;  %v3534_v20 = vld [vmem:[#allocation2 + $0x5f4] sm:$0xf0]  ;;  %v56_v22 = vld [vmem:[%s3948_s0 + $0xa0] sm:$0xff]  ;;  %v2954_v34 = vor.u32 %v3518_v16, %v2953_v15 }
  0x36   :  { %1713 = vmatpush.bf16.msrb.mxu2 %v2674_v26  ;;  %v42_v25 = vld [vmem:[%s3948_s0 + $0x30] sm:$0xff]  ;;  %v41_v27 = vld [vmem:[%s3948_s0 + $0x28] sm:$0xff]  ;;  %v43_v31 = vld [vmem:[%s3948_s0 + $0x38] sm:$0xff]  ;;  %v3741_v39 = vpack.c.bf16 %v56_v22, %v40_v21 }
  0x37   :  { %1727 = vmatpush.bf16.msrb.mxu3 %v2738_v30  ;;  %v58_v26 = vld [vmem:[%s3948_s0 + $0xb0] sm:$0xff]  ;;  %v57_v30 = vld [vmem:[%s3948_s0 + $0xa8] sm:$0xff]  ;;  %v59_v32 = vld [vmem:[%s3948_s0 + $0xb8] sm:$0xff] }
  0x38   :  { %1686 = vmatpush.bf16.msrb.mxu0 %v2538_v36  ;;  %v2817_v35 = vld [vmem:[#allocation2 + $0x460] sm:$0xf]  ;;  %v3484_v36 = vld [vmem:[#allocation2 + $0x464] sm:$0xf0]  ;;  %v3743_v43 = vpack.c.bf16 %v58_v26, %v42_v25  ;;  %v3745_v44 = vpack.c.bf16 %v57_v30, %v41_v27  ;;  %v3747_v47 = vpack.c.bf16 %v59_v32, %v43_v31  ;;  %v3482_v52 = vld [vmem:[#allocation2 + $0x454] sm:$0xf0] }
  0x39   :  { %1700 = vmatpush.bf16.msrb.mxu1 %v2602_v37  ;;  %v2881_v37 = vld [vmem:[#allocation2 + $0x4e0] sm:$0xf]  ;;  %v3500_v40 = vld [vmem:[#allocation2 + $0x4e4] sm:$0xf0]  ;;  %v2873_v53 = vld [vmem:[#allocation2 + $0x4d0] sm:$0xf] }
  0x3a   :  { %1714 = vmatpush.bf16.msrb.mxu2 %v2666_v38  ;;  %v3018_v38 = vor.u32 %v3534_v20, %v3017_v18  ;;  %v2945_v41 = vld [vmem:[#allocation2 + $0x560] sm:$0xf]  ;;  %v3532_v46 = vld [vmem:[#allocation2 + $0x5e4] sm:$0xf0]  ;;  %v2882_v49 = vor.u32 %v3500_v40, %v2881_v37  ;;  %v2937_v56 = vld [vmem:[#allocation2 + $0x550] sm:$0xf] }
  0x3b   :  { %1728 = vmatpush.bf16.msrb.mxu3 %v2730_v42  ;;  %v3516_v42 = vld [vmem:[#allocation2 + $0x564] sm:$0xf0]  ;;  %v3009_v45 = vld [vmem:[#allocation2 + $0x5e0] sm:$0xf]  ;;  %v3514_v57 = vld [vmem:[#allocation2 + $0x554] sm:$0xf0] }
  0x3c   :  { %1687 = vmatpush.bf16.msrb.mxu0 %v2530_v48  ;;  %v2818_v48 = vor.u32 %v3484_v36, %v2817_v35  ;;  %v3010_v54 = vor.u32 %v3532_v46, %v3009_v45  ;;  %v3001_v59 = vld [vmem:[#allocation2 + $0x5d0] sm:$0xf]  ;;  %v3530_v60 = vld [vmem:[#allocation2 + $0x5d4] sm:$0xf0]  ;;  %v2801_v0 = vld [vmem:[#allocation2 + $0x440] sm:$0xf] }
  0x3d   :  { %1701 = vmatpush.bf16.msrb.mxu1 %v2594_v50  ;;  %v2946_v50 = vor.u32 %v3516_v42, %v2945_v41  ;;  %v3480_v2 = vld [vmem:[#allocation2 + $0x444] sm:$0xf0]  ;;  %v2865_v3 = vld [vmem:[#allocation2 + $0x4c0] sm:$0xf]  ;;  %v3002_v4 = vor.u32 %v3530_v60, %v3001_v59  ;;  %v2793_v14 = vld [vmem:[#allocation2 + $0x430] sm:$0xf] }
  0x3e   :  { %1715 = vmatpush.bf16.msrb.mxu2 %v2658_v51  ;;  %v2809_v51 = vld [vmem:[#allocation2 + $0x450] sm:$0xf]  ;;  %v3512_v7 = vld [vmem:[#allocation2 + $0x544] sm:$0xf0]  ;;  %v2993_v8 = vld [vmem:[#allocation2 + $0x5c0] sm:$0xf] }
  0x3f   :  { %1729 = vmatpush.bf16.msrb.mxu3 %v2722_v55  ;;  %v3498_v55 = vld [vmem:[#allocation2 + $0x4d4] sm:$0xf0]  ;;  %v2810_v61 = vor.u32 %v3482_v52, %v2809_v51  ;;  %v3528_v9 = vld [vmem:[#allocation2 + $0x5c4] sm:$0xf0]  ;;  %v2857_v16 = vld [vmem:[#allocation2 + $0x4b0] sm:$0xf] }
  0x40   :  { %1688 = vmatpush.bf16.msrb.mxu0 %v2522_v63  ;;  %v2874_v62 = vor.u32 %v3498_v55, %v2873_v53  ;;  %v2938_v63 = vor.u32 %v3514_v57, %v2937_v56  ;;  %v3478_v15 = vld [vmem:[#allocation2 + $0x434] sm:$0xf0]  ;;  %v2994_v18 = vor.u32 %v3528_v9, %v2993_v8  ;;  %v2921_v20 = vld [vmem:[#allocation2 + $0x530] sm:$0xf]  ;;  %v2785_v27 = vld [vmem:[#allocation2 + $0x420] sm:$0xf] }
  0x41   :  { %1702 = vmatpush.bf16.msrb.mxu1 %v2586_v5  ;;  %v3496_v5 = vld [vmem:[#allocation2 + $0x4c4] sm:$0xf0]  ;;  %v3510_v21 = vld [vmem:[#allocation2 + $0x534] sm:$0xf0]  ;;  %v2985_v22 = vld [vmem:[#allocation2 + $0x5b0] sm:$0xf] }
  0x42   :  { %1716 = vmatpush.bf16.msrb.mxu2 %v2650_v6  ;;  %v2929_v6 = vld [vmem:[#allocation2 + $0x540] sm:$0xf]  ;;  %v2866_v12 = vor.u32 %v3496_v5, %v2865_v3  ;;  %v2922_v26 = vor.u32 %v3510_v21, %v2921_v20  ;;  %v3492_v31 = vld [vmem:[#allocation2 + $0x4a4] sm:$0xf0]  ;;  %v2777_v37 = vld [vmem:[#allocation2 + $0x410] sm:$0xf] }
  0x43   :  { %1730 = vmatpush.bf16.msrb.mxu3 %v2714_v11  ;;  %v2802_v11 = vor.u32 %v3480_v2, %v2801_v0  ;;  %v2930_v13 = vor.u32 %v3512_v7, %v2929_v6  ;;  %v2913_v32 = vld [vmem:[#allocation2 + $0x520] sm:$0xf]  ;;  %v3524_v35 = vld [vmem:[#allocation2 + $0x5a4] sm:$0xf0]  ;;  %v3474_v41 = vld [vmem:[#allocation2 + $0x414] sm:$0xf0] }
  0x44   :  { %1689 = vmatpush.bf16.msrb.mxu0 %v2514_v19  ;;  %v3494_v19 = vld [vmem:[#allocation2 + $0x4b4] sm:$0xf0]  ;;  %v2841_v42 = vld [vmem:[#allocation2 + $0x490] sm:$0xf]  ;;  %v2769_v52 = vld [vmem:[#allocation2 + $0x400] sm:$0xf] }
  0x45   :  { %1703 = vmatpush.bf16.msrb.mxu1 %v2578_v23  ;;  %v3526_v23 = vld [vmem:[#allocation2 + $0x5b4] sm:$0xf0]  ;;  %v2858_v25 = vor.u32 %v3494_v19, %v2857_v16  ;;  %v3472_v53 = vld [vmem:[#allocation2 + $0x404] sm:$0xf0]  ;;  %v2833_v55 = vld [vmem:[#allocation2 + $0x480] sm:$0xf] }
  0x46   :  { %1717 = vmatpush.bf16.msrb.mxu2 %v2642_v24  ;;  %v2794_v24 = vor.u32 %v3478_v15, %v2793_v14  ;;  %v2986_v30 = vor.u32 %v3526_v23, %v2985_v22  ;;  %v3490_v45 = vld [vmem:[#allocation2 + $0x494] sm:$0xf0]  ;;  %v3488_v56 = vld [vmem:[#allocation2 + $0x484] sm:$0xf0]  ;;  %v2897_v57 = vld [vmem:[#allocation2 + $0x500] sm:$0xf]  ;;  %v2770_v9 = vor.u32 %v3472_v53, %v2769_v52 }
  0x47   :  { %1731 = vmatpush.bf16.msrb.mxu3 %v2706_v28  ;;  %1690 = vmatmul.bf16.vlgmr.msrb.gmra.mxu0 %v3741_v39  ;;  %v3476_v28 = vld [vmem:[#allocation2 + $0x424] sm:$0xf0]  ;;  %v3522_v51 = vld [vmem:[#allocation2 + $0x594] sm:$0xf0]  ;;  %v2842_v60 = vor.u32 %v3490_v45, %v2841_v42  ;;  %v3081_v0 = vld [vmem:[#allocation2 + $0x670] sm:$0xf]  ;;  %v2834_v14 = vor.u32 %v3488_v56, %v2833_v55 }
  0x48   :  { %1738 = vmatpush.bf16.msra.mxu0 %v2826_v29  ;;  %1704 = vmatmul.bf16.vlgmr.msrb.gmra.mxu1 %v3745_v44  ;;  %v2849_v29 = vld [vmem:[#allocation2 + $0x4a0] sm:$0xf]  ;;  %v2786_v36 = vor.u32 %v3476_v28, %v2785_v27  ;;  %v3504_v59 = vld [vmem:[#allocation2 + $0x504] sm:$0xf0]  ;;  %v3550_v3 = vld [vmem:[#allocation2 + $0x674] sm:$0xf0] }
  0x49   :  { %1752 = vmatpush.bf16.msra.mxu1 %v2890_v33  ;;  %1718 = vmatmul.bf16.vlgmr.msrb.gmra.mxu2 %v3743_v43  ;;  %v3508_v33 = vld [vmem:[#allocation2 + $0x524] sm:$0xf0]  ;;  %v3566_v5 = vld [vmem:[#allocation2 + $0x6f4] sm:$0xf0]  ;;  %v3209_v6 = vld [vmem:[#allocation2 + $0x770] sm:$0xf]  ;;  %v2898_v15 = vor.u32 %v3504_v59, %v2897_v57  ;;  %v3082_v21 = vor.u32 %v3550_v3, %v3081_v0 }
  0x4a   :  { %1766 = vmatpush.bf16.msra.mxu2 %v2954_v34  ;;  %1732 = vmatmul.bf16.vlgmr.msrb.gmra.mxu3 %v3747_v47  ;;  %v2977_v34 = vld [vmem:[#allocation2 + $0x5a0] sm:$0xf]  ;;  %v2914_v40 = vor.u32 %v3508_v33, %v2913_v32  ;;  %v3582_v7 = vld [vmem:[#allocation2 + $0x774] sm:$0xf0]  ;;  %v3273_v8 = vld [vmem:[#allocation2 + $0x7f0] sm:$0xf] }
  0x4b   :  { %1780 = vmatpush.bf16.msra.mxu3 %v3018_v38  ;;  %v2850_v38 = vor.u32 %v3492_v31, %v2849_v29  ;;  %v2978_v46 = vor.u32 %v3524_v35, %v2977_v34  ;;  %v46_v16 = vld [vmem:[%s3948_s0 + $0x50] sm:$0xff]  ;;  %v45_v19 = vld [vmem:[%s3948_s0 + $0x48] sm:$0xff]  ;;  %v47_v23 = vld [vmem:[%s3948_s0 + $0x58] sm:$0xff] }
  0x4c   :  { %1739 = vmatpush.bf16.msra.mxu0 %v2818_v48  ;;  %v2905_v48 = vld [vmem:[#allocation2 + $0x510] sm:$0xf]  ;;  %v61_v22 = vld [vmem:[%s3948_s0 + $0xc8] sm:$0xff]  ;;  %v3073_v27 = vld [vmem:[#allocation2 + $0x660] sm:$0xf] }
  0x4d   :  { %1753 = vmatpush.bf16.msra.mxu1 %v2882_v49  ;;  %v3506_v49 = vld [vmem:[#allocation2 + $0x514] sm:$0xf0]  ;;  %v3548_v28 = vld [vmem:[#allocation2 + $0x664] sm:$0xf0]  ;;  %v3137_v29 = vld [vmem:[#allocation2 + $0x6e0] sm:$0xf] }
  0x4e   :  { %1767 = vmatpush.bf16.msra.mxu2 %v2946_v50  ;;  %v2969_v50 = vld [vmem:[#allocation2 + $0x590] sm:$0xf]  ;;  %v3564_v32 = vld [vmem:[#allocation2 + $0x6e4] sm:$0xf0]  ;;  %v3201_v33 = vld [vmem:[#allocation2 + $0x760] sm:$0xf] }
  0x4f   :  { %1781 = vmatpush.bf16.msra.mxu3 %v3010_v54  ;;  %v2778_v54 = vor.u32 %v3474_v41, %v2777_v37  ;;  %v2970_v2 = vor.u32 %v3522_v51, %v2969_v50  ;;  %v3580_v34 = vld [vmem:[#allocation2 + $0x764] sm:$0xf0]  ;;  %v3265_v37 = vld [vmem:[#allocation2 + $0x7e0] sm:$0xf]  ;;  %v3074_v41 = vor.u32 %v3548_v28, %v3073_v27  ;;  %v3138_v42 = vor.u32 %v3564_v32, %v3137_v29  ;;  %v3562_v51 = vld [vmem:[#allocation2 + $0x6d4] sm:$0xf0] }
  0x50   :  { %1740 = vmatpush.bf16.msra.mxu0 %v2810_v61  ;;  %v2906_v61 = vor.u32 %v3506_v49, %v2905_v48  ;;  %v3202_v45 = vor.u32 %v3580_v34, %v3201_v33  ;;  %v3546_v48 = vld [vmem:[#allocation2 + $0x654] sm:$0xf0]  ;;  %v3129_v49 = vld [vmem:[#allocation2 + $0x6d0] sm:$0xf]  ;;  %v3560_v0 = vld [vmem:[#allocation2 + $0x6c4] sm:$0xf0] }
  0x51   :  { %1754 = vmatpush.bf16.msra.mxu1 %v2874_v62  ;;  %v2961_v62 = vld [vmem:[#allocation2 + $0x580] sm:$0xf]  ;;  %v3193_v52 = vld [vmem:[#allocation2 + $0x750] sm:$0xf]  ;;  %v3578_v53 = vld [vmem:[#allocation2 + $0x754] sm:$0xf0]  ;;  %v3130_v57 = vor.u32 %v3562_v51, %v3129_v49 }
  0x52   :  { %1768 = vmatpush.bf16.msra.mxu2 %v2938_v63  ;;  %v3520_v63 = vld [vmem:[#allocation2 + $0x584] sm:$0xf0]  ;;  %v3594_v55 = vld [vmem:[#allocation2 + $0x7d4] sm:$0xf0]  ;;  %v3194_v59 = vor.u32 %v3578_v53, %v3193_v52  ;;  %v3169_v28 = vld [vmem:[#allocation2 + $0x720] sm:$0xf] }
  0x53   :  { %1782 = vmatpush.bf16.msra.mxu3 %v3002_v4  ;;  %v3145_v4 = vld [vmem:[#allocation2 + $0x6f0] sm:$0xf]  ;;  %v2962_v20 = vor.u32 %v3520_v63, %v2961_v62  ;;  %v3121_v62 = vld [vmem:[#allocation2 + $0x6c0] sm:$0xf]  ;;  %v3576_v3 = vld [vmem:[#allocation2 + $0x744] sm:$0xf0] }
  0x54   :  { %1741 = vmatpush.bf16.msra.mxu0 %v2802_v11  ;;  %v3598_v11 = vld [vmem:[#allocation2 + $0x7f4] sm:$0xf0]  ;;  %v3556_v27 = vld [vmem:[#allocation2 + $0x6a4] sm:$0xf0]  ;;  %v3033_v34 = vld [vmem:[#allocation2 + $0x610] sm:$0xf] }
  0x55   :  { %1755 = vmatpush.bf16.msra.mxu1 %v2866_v12  ;;  %v44_v12 = vld [vmem:[%s3948_s0 + $0x40] sm:$0xff]  ;;  %v3572_v29 = vld [vmem:[#allocation2 + $0x724] sm:$0xf0]  ;;  %v3570_v49 = vld [vmem:[#allocation2 + $0x714] sm:$0xf0] }
  0x56   :  { %1769 = vmatpush.bf16.msra.mxu2 %v2930_v13  ;;  %v60_v13 = vld [vmem:[%s3948_s0 + $0xc0] sm:$0xff]  ;;  %v3588_v32 = vld [vmem:[#allocation2 + $0x7a4] sm:$0xf0]  ;;  %v3586_v51 = vld [vmem:[#allocation2 + $0x794] sm:$0xf0] }
  0x57   :  { %1783 = vmatpush.bf16.msra.mxu3 %v2994_v18  ;;  %v62_v18 = vld [vmem:[%s3948_s0 + $0xd0] sm:$0xff]  ;;  %v3777_v31 = vpack.c.bf16 %v60_v13, %v44_v12  ;;  %v3025_v52 = vld [vmem:[#allocation2 + $0x600] sm:$0xf]  ;;  %v3536_v53 = vld [vmem:[#allocation2 + $0x604] sm:$0xf0] }
  0x58   :  { %1742 = vmatpush.bf16.msra.mxu0 %v2794_v24  ;;  %v63_v24 = vld [vmem:[%s3948_s0 + $0xd8] sm:$0xff]  ;;  %v3779_v35 = vpack.c.bf16 %v62_v18, %v46_v16  ;;  %v3113_v12 = vld [vmem:[#allocation2 + $0x6b0] sm:$0xf] }
  0x59   :  { %1756 = vmatpush.bf16.msra.mxu1 %v2858_v25  ;;  %v3146_v25 = vor.u32 %v3566_v5, %v3145_v4  ;;  %v3249_v4 = vld [vmem:[#allocation2 + $0x7c0] sm:$0xf]  ;;  %v3592_v5 = vld [vmem:[#allocation2 + $0x7c4] sm:$0xf0]  ;;  %v3574_v16 = vld [vmem:[#allocation2 + $0x734] sm:$0xf0] }
  0x5a   :  { %1770 = vmatpush.bf16.msra.mxu2 %v2922_v26  ;;  %v3210_v26 = vor.u32 %v3582_v7, %v3209_v6  ;;  %v3122_v7 = vor.u32 %v3560_v0, %v3121_v62  ;;  %v3250_v13 = vor.u32 %v3592_v5, %v3249_v4  ;;  %v3241_v18 = vld [vmem:[#allocation2 + $0x7b0] sm:$0xf]  ;;  %v3217_v62 = vld [vmem:[#allocation2 + $0x780] sm:$0xf]  ;;  %v3357_v0 = vld [vmem:[#allocation2 + $0x74] sm:$0xf] }
  0x5b   :  { %1784 = vmatpush.bf16.msra.mxu3 %v2986_v30  ;;  %v3274_v30 = vor.u32 %v3598_v11, %v3273_v8  ;;  %v3542_v11 = vld [vmem:[#allocation2 + $0x634] sm:$0xf0]  ;;  %v3373_v4 = vld [vmem:[#allocation2 + $0xf4] sm:$0xf]  ;;  %v2379_v5 = vld [vmem:[#allocation2 + $0xf8] sm:$0xf0] }
  0x5c   :  { %1743 = vmatpush.bf16.msra.mxu0 %v2786_v36  ;;  %v3781_v36 = vpack.c.bf16 %v61_v22, %v45_v19  ;;  %v3590_v19 = vld [vmem:[#allocation2 + $0x7b4] sm:$0xf0] }
  0x5d   :  { %1757 = vmatpush.bf16.msra.mxu1 %v2850_v38  ;;  %v3596_v38 = vld [vmem:[#allocation2 + $0x7e4] sm:$0xf0] }
  0x5e   :  { %1771 = vmatpush.bf16.msra.mxu2 %v2914_v40  ;;  %v3783_v40 = vpack.c.bf16 %v63_v24, %v47_v23  ;;  %v3266_v50 = vor.u32 %v3596_v38, %v3265_v37  ;;  %v3041_v23 = vld [vmem:[#allocation2 + $0x620] sm:$0xf]  ;;  %v3540_v24 = vld [vmem:[#allocation2 + $0x624] sm:$0xf0]  ;;  %v3538_v37 = vld [vmem:[#allocation2 + $0x614] sm:$0xf0] }
  0x5f   :  { %1785 = vmatpush.bf16.msra.mxu3 %v2978_v46  ;;  %v3065_v46 = vld [vmem:[#allocation2 + $0x650] sm:$0xf]  ;;  %v3042_v33 = vor.u32 %v3540_v24, %v3041_v23  ;;  %v51_v23 = vld [vmem:[%s3948_s0 + $0x78] sm:$0xff] }
  0x60   :  { %1744 = vmatpush.bf16.msra.mxu0 %v2778_v54  ;;  %v3257_v54 = vld [vmem:[#allocation2 + $0x7d0] sm:$0xf]  ;;  %v3066_v56 = vor.u32 %v3546_v48, %v3065_v46  ;;  %v67_v24 = vld [vmem:[%s3948_s0 + $0xf8] sm:$0xff] }
  0x61   :  { %1758 = vmatpush.bf16.msra.mxu1 %v2842_v60  ;;  %v3057_v60 = vld [vmem:[#allocation2 + $0x640] sm:$0xf]  ;;  %v3258_v63 = vor.u32 %v3594_v55, %v3257_v54  ;;  %v3161_v46 = vld [vmem:[#allocation2 + $0x710] sm:$0xf]  ;;  %v3034_v54 = vor.u32 %v3538_v37, %v3033_v34  ;;  %v3387_v34 = vld [vmem:[#allocation2 + $0x164] sm:$0xf] }
  0x62   :  { %1772 = vmatpush.bf16.msra.mxu2 %v2906_v61  ;;  %v3544_v61 = vld [vmem:[#allocation2 + $0x644] sm:$0xf0]  ;;  %v3089_v55 = vld [vmem:[#allocation2 + $0x680] sm:$0xf]  ;;  %v2435_v37 = vld [vmem:[#allocation2 + $0x168] sm:$0xf0] }
  0x63   :  { %1786 = vmatpush.bf16.msra.mxu3 %v2970_v2  ;;  %v3185_v2 = vld [vmem:[#allocation2 + $0x740] sm:$0xf]  ;;  %v3058_v6 = vor.u32 %v3544_v61, %v3057_v60  ;;  %v3162_v61 = vor.u32 %v3570_v49, %v3161_v46  ;;  %v3819_v46 = vpack.c.bf16 %v67_v24, %v51_v23  ;;  %v2475_v23 = vld [vmem:[#allocation2 + $0x1b8] sm:$0xf0] }
  0x64   :  { %1745 = vmatpush.bf16.msra.mxu0 %v2770_v9  ;;  %v3186_v8 = vor.u32 %v3576_v3, %v3185_v2  ;;  %v3049_v9 = vld [vmem:[#allocation2 + $0x630] sm:$0xf]  ;;  %v2315_v3 = vld [vmem:[#allocation2 + $0x78] sm:$0xf0] }
  0x65   :  { %1759 = vmatpush.bf16.msra.mxu1 %v2834_v14  ;;  %v3558_v14 = vld [vmem:[#allocation2 + $0x6b4] sm:$0xf0] }
  0x66   :  { %1773 = vmatpush.bf16.msra.mxu2 %v2898_v15  ;;  %v3177_v15 = vld [vmem:[#allocation2 + $0x730] sm:$0xf] }
  0x67   :  { %1787 = vmatpush.bf16.msra.mxu3 %v2962_v20  ;;  %1746 = vmatmul.bf16.vlgmr.msra.gmra.mxu0 %v3777_v31  ;;  %v3050_v20 = vor.u32 %v3542_v11, %v3049_v9  ;;  %v3178_v22 = vor.u32 %v3574_v16, %v3177_v15  ;;  %v3026_v9 = vor.u32 %v3536_v53, %v3025_v52  ;;  %v2507_v11 = vld [vmem:[#allocation2 + $0x1f8] sm:$0xf0]  ;;  %v50_v16 = vld [vmem:[%s3948_s0 + $0x70] sm:$0xff] }
  0x68   :  { %1794 = vmatpush.bf16.msrb.mxu0 %v3082_v21  ;;  %1760 = vmatmul.bf16.vlgmr.msra.gmra.mxu1 %v3781_v36  ;;  %v3114_v21 = vor.u32 %v3558_v14, %v3113_v12  ;;  %v48_v12 = vld [vmem:[%s3948_s0 + $0x60] sm:$0xff]  ;;  %v2299_v52 = vld [vmem:[#allocation2 + $0x58] sm:$0xf0]  ;;  %v3369_v53 = vld [vmem:[#allocation2 + $0xd4] sm:$0xf] }
  0x69   :  { %1808 = vmatpush.bf16.msrb.mxu1 %v3146_v25  ;;  %1774 = vmatmul.bf16.vlgmr.msra.gmra.mxu2 %v3779_v35  ;;  %v3105_v25 = vld [vmem:[#allocation2 + $0x6a0] sm:$0xf] }
  0x6a   :  { %1822 = vmatpush.bf16.msrb.mxu2 %v3210_v26  ;;  %1788 = vmatmul.bf16.vlgmr.msra.gmra.mxu3 %v3783_v40  ;;  %v3242_v26 = vor.u32 %v3590_v19, %v3241_v18  ;;  %v3106_v38 = vor.u32 %v3556_v27, %v3105_v25  ;;  %v66_v18 = vld [vmem:[%s3948_s0 + $0xf0] sm:$0xff]  ;;  %v49_v19 = vld [vmem:[%s3948_s0 + $0x68] sm:$0xff]  ;;  %v2382_v25 = vor.u32 %v3373_v4, %v2379_v5  ;;  %v3355_v27 = vld [vmem:[#allocation2 + $0x64] sm:$0xf] }
  0x6b   :  { %1836 = vmatpush.bf16.msrb.mxu3 %v3274_v30  ;;  %v3233_v30 = vld [vmem:[#allocation2 + $0x7a0] sm:$0xf]  ;;  %v2355_v5 = vld [vmem:[#allocation2 + $0xc8] sm:$0xf0] }
  0x6c   :  { %1795 = vmatpush.bf16.msrb.mxu0 %v3074_v41  ;;  %v3170_v41 = vor.u32 %v3572_v29, %v3169_v28  ;;  %v3234_v48 = vor.u32 %v3588_v32, %v3233_v30  ;;  %v2307_v28 = vld [vmem:[#allocation2 + $0x68] sm:$0xf0]  ;;  %v3371_v29 = vld [vmem:[#allocation2 + $0xe4] sm:$0xf] }
  0x6d   :  { %1809 = vmatpush.bf16.msrb.mxu1 %v3138_v42  ;;  %v3097_v42 = vld [vmem:[#allocation2 + $0x690] sm:$0xf] }
  0x6e   :  { %1823 = vmatpush.bf16.msrb.mxu2 %v3202_v45  ;;  %v3554_v45 = vld [vmem:[#allocation2 + $0x694] sm:$0xf0] }
  0x6f   :  { %1837 = vmatpush.bf16.msrb.mxu3 %v3266_v50  ;;  %v3225_v50 = vld [vmem:[#allocation2 + $0x790] sm:$0xf]  ;;  %v3098_v60 = vor.u32 %v3554_v45, %v3097_v42  ;;  %v3403_v42 = vld [vmem:[#allocation2 + $0x1e4] sm:$0xf]  ;;  %v2499_v45 = vld [vmem:[#allocation2 + $0x1e8] sm:$0xf0] }
  0x70   :  { %1796 = vmatpush.bf16.msrb.mxu0 %v3066_v56  ;;  %v3552_v56 = vld [vmem:[#allocation2 + $0x684] sm:$0xf0]  ;;  %v3226_v2 = vor.u32 %v3586_v51, %v3225_v50  ;;  %v2438_v50 = vor.u32 %v3387_v34, %v2435_v37  ;;  %v3353_v51 = vld [vmem:[#allocation2 + $0x54] sm:$0xf]  ;;  %v3379_v34 = vld [vmem:[#allocation2 + $0x124] sm:$0xf] }
  0x71   :  { %1810 = vmatpush.bf16.msrb.mxu1 %v3130_v57  ;;  %v3153_v57 = vld [vmem:[#allocation2 + $0x700] sm:$0xf]  ;;  %v3090_v14 = vor.u32 %v3552_v56, %v3089_v55  ;;  %v2363_v55 = vld [vmem:[#allocation2 + $0xd8] sm:$0xf0]  ;;  %v3385_v56 = vld [vmem:[#allocation2 + $0x154] sm:$0xf] }
  0x72   :  { %1824 = vmatpush.bf16.msrb.mxu2 %v3194_v59  ;;  %v3568_v59 = vld [vmem:[#allocation2 + $0x704] sm:$0xf0]  ;;  %v2403_v37 = vld [vmem:[#allocation2 + $0x128] sm:$0xf0] }
  0x73   :  { %1838 = vmatpush.bf16.msrb.mxu3 %v3258_v63  ;;  %v3584_v63 = vld [vmem:[#allocation2 + $0x784] sm:$0xf0]  ;;  %v3154_v15 = vor.u32 %v3568_v59, %v3153_v57  ;;  %v2427_v57 = vld [vmem:[#allocation2 + $0x158] sm:$0xf0]  ;;  %v3401_v59 = vld [vmem:[#allocation2 + $0x1d4] sm:$0xf] }
  0x74   :  { %1797 = vmatpush.bf16.msrb.mxu0 %v3058_v6  ;;  %v3389_v6 = vld [vmem:[#allocation2 + $0x174] sm:$0xf] }
  0x75   :  { %1811 = vmatpush.bf16.msrb.mxu1 %v3122_v7  ;;  %v2443_v7 = vld [vmem:[#allocation2 + $0x178] sm:$0xf0] }
  0x76   :  { %1825 = vmatpush.bf16.msrb.mxu2 %v3186_v8  ;;  %v3405_v8 = vld [vmem:[#allocation2 + $0x1f4] sm:$0xf] }
  0x77   :  { %1839 = vmatpush.bf16.msrb.mxu3 %v3250_v13  ;;  %v64_v13 = vld [vmem:[%s3948_s0 + $0xe0] sm:$0xff]  ;;  %v2510_v30 = vor.u32 %v3405_v8, %v2507_v11 }
  0x78   :  { %1798 = vmatpush.bf16.msrb.mxu0 %v3050_v20  ;;  %v3218_v20 = vor.u32 %v3584_v63, %v3217_v62  ;;  %v3813_v32 = vpack.c.bf16 %v64_v13, %v48_v12  ;;  %v2366_v62 = vor.u32 %v3369_v53, %v2363_v55  ;;  %v2430_v63 = vor.u32 %v3385_v56, %v2427_v57  ;;  %v3399_v8 = vld [vmem:[#allocation2 + $0x1c4] sm:$0xf]  ;;  %v3361_v53 = vld [vmem:[#allocation2 + $0x94] sm:$0xf]  ;;  %v2331_v55 = vld [vmem:[#allocation2 + $0x98] sm:$0xf0] }
  0x79   :  { %1812 = vmatpush.bf16.msrb.mxu1 %v3114_v21  ;;  %v2318_v21 = vor.u32 %v3357_v0, %v2315_v3  ;;  %v3351_v0 = vld [vmem:[#allocation2 + $0x44] sm:$0xf]  ;;  %v3377_v56 = vld [vmem:[#allocation2 + $0x114] sm:$0xf]  ;;  %v2395_v57 = vld [vmem:[#allocation2 + $0x118] sm:$0xf0] }
  0x7a   :  { %1826 = vmatpush.bf16.msrb.mxu2 %v3178_v22  ;;  %v65_v22 = vld [vmem:[%s3948_s0 + $0xe8] sm:$0xff]  ;;  %v3367_v3 = vld [vmem:[#allocation2 + $0xc4] sm:$0xf] }
  0x7b   :  { %1840 = vmatpush.bf16.msrb.mxu3 %v3242_v26  ;;  %v2446_v26 = vor.u32 %v3389_v6, %v2443_v7  ;;  %v3383_v6 = vld [vmem:[#allocation2 + $0x144] sm:$0xf]  ;;  %v2419_v7 = vld [vmem:[#allocation2 + $0x148] sm:$0xf0]  ;;  %v2358_v12 = vor.u32 %v3367_v3, %v2355_v5 }
  0x7c   :  { %1799 = vmatpush.bf16.msrb.mxu0 %v3042_v33  ;;  %v2371_v33 = vld [vmem:[#allocation2 + $0xe8] sm:$0xf0]  ;;  %v2422_v13 = vor.u32 %v3383_v6, %v2419_v7  ;;  %v3359_v3 = vld [vmem:[#allocation2 + $0x84] sm:$0xf] }
  0x7d   :  { %1813 = vmatpush.bf16.msrb.mxu1 %v3106_v38  ;;  %v3815_v38 = vpack.c.bf16 %v66_v18, %v50_v16  ;;  %v2374_v49 = vor.u32 %v3371_v29, %v2371_v33  ;;  %v3365_v16 = vld [vmem:[#allocation2 + $0xb4] sm:$0xf]  ;;  %v3363_v29 = vld [vmem:[#allocation2 + $0xa4] sm:$0xf]  ;;  %v2339_v33 = vld [vmem:[#allocation2 + $0xa8] sm:$0xf0] }
  0x7e   :  { %1827 = vmatpush.bf16.msrb.mxu2 %v3170_v41  ;;  %v3817_v41 = vpack.c.bf16 %v65_v22, %v49_v19  ;;  %v2347_v19 = vld [vmem:[#allocation2 + $0xb8] sm:$0xf0]  ;;  %v3397_v22 = vld [vmem:[#allocation2 + $0x1b4] sm:$0xf]  ;;  %v3375_v5 = vld [vmem:[#allocation2 + $0x104] sm:$0xf] }
  0x7f   :  { %1841 = vmatpush.bf16.msrb.mxu3 %v3234_v48  ;;  %v2310_v48 = vor.u32 %v3355_v27, %v2307_v28  ;;  %v3347_v27 = vld [vmem:[#allocation2 + $0x24] sm:$0xf]  ;;  %v2275_v28 = vld [vmem:[#allocation2 + $0x28] sm:$0xf0] }
  0x80   :  { %1800 = vmatpush.bf16.msrb.mxu0 %v3034_v54  ;;  %v2502_v54 = vor.u32 %v3403_v42, %v2499_v45  ;;  %v3395_v42 = vld [vmem:[#allocation2 + $0x1a4] sm:$0xf]  ;;  %v2467_v45 = vld [vmem:[#allocation2 + $0x1a8] sm:$0xf0] }
  0x81   :  { %1814 = vmatpush.bf16.msrb.mxu1 %v3098_v60  ;;  %v2491_v60 = vld [vmem:[#allocation2 + $0x1d8] sm:$0xf0]  ;;  %v2387_v7 = vld [vmem:[#allocation2 + $0x108] sm:$0xf0] }
  0x82   :  { %1828 = vmatpush.bf16.msrb.mxu2 %v3162_v61  ;;  %v2302_v61 = vor.u32 %v3353_v51, %v2299_v52  ;;  %v2494_v4 = vor.u32 %v3401_v59, %v2491_v60  ;;  %v3345_v51 = vld [vmem:[#allocation2 + $0x14] sm:$0xf]  ;;  %v2267_v52 = vld [vmem:[#allocation2 + $0x18] sm:$0xf0] }
  0x83   :  { %1842 = vmatpush.bf16.msrb.mxu3 %v3226_v2  ;;  %v2291_v2 = vld [vmem:[#allocation2 + $0x48] sm:$0xf0]  ;;  %v3393_v59 = vld [vmem:[#allocation2 + $0x194] sm:$0xf]  ;;  %v2459_v60 = vld [vmem:[#allocation2 + $0x198] sm:$0xf0] }
  0x84   :  { %1801 = vmatpush.bf16.msrb.mxu0 %v3026_v9  ;;  %v2483_v9 = vld [vmem:[#allocation2 + $0x1c8] sm:$0xf0]  ;;  %v2294_v11 = vor.u32 %v3351_v0, %v2291_v2  ;;  %v2334_v0 = vor.u32 %v3361_v53, %v2331_v55  ;;  %v2398_v2 = vor.u32 %v3377_v56, %v2395_v57  ;;  %v2462_v6 = vor.u32 %v3393_v59, %v2459_v60  ;;  %v3433_v53 = vld [vmem:[#allocation2 + $0x2d4] sm:$0xf]  ;;  %v2619_v55 = vld [vmem:[#allocation2 + $0x2d8] sm:$0xf0] }
  0x85   :  { %1815 = vmatpush.bf16.msrb.mxu1 %v3090_v14  ;;  %v3349_v14 = vld [vmem:[#allocation2 + $0x34] sm:$0xf]  ;;  %v2486_v18 = vor.u32 %v3399_v8, %v2483_v9  ;;  %v3391_v8 = vld [vmem:[#allocation2 + $0x184] sm:$0xf]  ;;  %v2451_v9 = vld [vmem:[#allocation2 + $0x188] sm:$0xf0] }
  0x86   :  { %1829 = vmatpush.bf16.msrb.mxu2 %v3154_v15  ;;  %v2283_v15 = vld [vmem:[#allocation2 + $0x38] sm:$0xf0]  ;;  %v3449_v56 = vld [vmem:[#allocation2 + $0x354] sm:$0xf] }
  0x87   :  { %1843 = vmatpush.bf16.msrb.mxu3 %v3218_v20  ;;  %1802 = vmatmul.bf16.vlgmr.msrb.gmra.mxu0 %v3813_v32  ;;  %v3381_v20 = vld [vmem:[#allocation2 + $0x134] sm:$0xf]  ;;  %v2286_v24 = vor.u32 %v3349_v14, %v2283_v15  ;;  %v2635_v15 = vld [vmem:[#allocation2 + $0x2f8] sm:$0xf0] }
  0x88   :  { %1850 = vmatpush.bf16.msra.mxu0 %v2318_v21  ;;  %1816 = vmatmul.bf16.vlgmr.msrb.gmra.mxu1 %v3817_v41  ;;  %v2411_v21 = vld [vmem:[#allocation2 + $0x138] sm:$0xf0]  ;;  %v3465_v59 = vld [vmem:[#allocation2 + $0x3d4] sm:$0xf] }
  0x89   :  { %1864 = vmatpush.bf16.msra.mxu1 %v2382_v25  ;;  %1830 = vmatmul.bf16.vlgmr.msrb.gmra.mxu2 %v3815_v38  ;;  %v2350_v25 = vor.u32 %v3365_v16, %v2347_v19  ;;  %v3453_v16 = vld [vmem:[#allocation2 + $0x374] sm:$0xf]  ;;  %v2683_v57 = vld [vmem:[#allocation2 + $0x358] sm:$0xf0] }
  0x8a   :  { %1878 = vmatpush.bf16.msra.mxu2 %v2446_v26  ;;  %1844 = vmatmul.bf16.vlgmr.msrb.gmra.mxu3 %v3819_v46  ;;  %v2414_v26 = vor.u32 %v3381_v20, %v2411_v21  ;;  %v2390_v20 = vor.u32 %v3375_v5, %v2387_v7  ;;  %v3469_v21 = vld [vmem:[#allocation2 + $0x3f4] sm:$0xf]  ;;  %v2747_v60 = vld [vmem:[#allocation2 + $0x3d8] sm:$0xf0]  ;;  %v3447_v5 = vld [vmem:[#allocation2 + $0x344] sm:$0xf] }
  0x8b   :  { %1892 = vmatpush.bf16.msra.mxu3 %v2510_v30  ;;  %v2478_v30 = vor.u32 %v3397_v22, %v2475_v23  ;;  %v2763_v22 = vld [vmem:[#allocation2 + $0x3f8] sm:$0xf0]  ;;  %v2454_v23 = vor.u32 %v3391_v8, %v2451_v9  ;;  %v3463_v7 = vld [vmem:[#allocation2 + $0x3c4] sm:$0xf]  ;;  %v3413_v9 = vld [vmem:[#allocation2 + $0x234] sm:$0xf] }
  0x8c   :  { %1851 = vmatpush.bf16.msra.mxu0 %v2310_v48  ;;  %v2278_v48 = vor.u32 %v3347_v27, %v2275_v28  ;;  %v3419_v27 = vld [vmem:[#allocation2 + $0x264] sm:$0xf]  ;;  %v2563_v28 = vld [vmem:[#allocation2 + $0x268] sm:$0xf0] }
  0x8d   :  { %1865 = vmatpush.bf16.msra.mxu1 %v2374_v49  ;;  %v2342_v49 = vor.u32 %v3363_v29, %v2339_v33  ;;  %v3435_v29 = vld [vmem:[#allocation2 + $0x2e4] sm:$0xf]  ;;  %v2627_v33 = vld [vmem:[#allocation2 + $0x2e8] sm:$0xf0] }
  0x8e   :  { %1879 = vmatpush.bf16.msra.mxu2 %v2438_v50  ;;  %v2406_v50 = vor.u32 %v3379_v34, %v2403_v37  ;;  %v3451_v34 = vld [vmem:[#allocation2 + $0x364] sm:$0xf]  ;;  %v2691_v37 = vld [vmem:[#allocation2 + $0x368] sm:$0xf0] }
  0x8f   :  { %1893 = vmatpush.bf16.msra.mxu3 %v2502_v54  ;;  %v2470_v54 = vor.u32 %v3395_v42, %v2467_v45  ;;  %v3467_v42 = vld [vmem:[#allocation2 + $0x3e4] sm:$0xf]  ;;  %v2755_v45 = vld [vmem:[#allocation2 + $0x3e8] sm:$0xf0] }
  0x90   :  { %1852 = vmatpush.bf16.msra.mxu0 %v2302_v61  ;;  %v2270_v61 = vor.u32 %v3345_v51, %v2267_v52  ;;  %v3417_v51 = vld [vmem:[#allocation2 + $0x254] sm:$0xf]  ;;  %v2555_v52 = vld [vmem:[#allocation2 + $0x258] sm:$0xf0] }
  0x91   :  { %1866 = vmatpush.bf16.msra.mxu1 %v2366_v62  ;;  %v3343_v62 = vld [vmem:[#allocation2 + $0x4] sm:$0xf] }
  0x92   :  { %1880 = vmatpush.bf16.msra.mxu2 %v2430_v63  ;;  %v2259_v63 = vld [vmem:[#allocation2 + $0x8] sm:$0xf0] }
  0x93   :  { %1894 = vmatpush.bf16.msra.mxu3 %v2494_v4  ;;  %v2323_v4 = vld [vmem:[#allocation2 + $0x88] sm:$0xf0]  ;;  %v2262_v14 = vor.u32 %v3343_v62, %v2259_v63  ;;  %v2622_v62 = vor.u32 %v3433_v53, %v2619_v55  ;;  %v2686_v63 = vor.u32 %v3449_v56, %v2683_v57  ;;  %v2651_v53 = vld [vmem:[#allocation2 + $0x318] sm:$0xf0]  ;;  %v3407_v57 = vld [vmem:[#allocation2 + $0x204] sm:$0xf] }
  0x94   :  { %1853 = vmatpush.bf16.msra.mxu0 %v2294_v11  ;;  %v3421_v11 = vld [vmem:[#allocation2 + $0x274] sm:$0xf]  ;;  %v2326_v19 = vor.u32 %v3359_v3, %v2323_v4  ;;  %v3431_v3 = vld [vmem:[#allocation2 + $0x2c4] sm:$0xf]  ;;  %v2750_v4 = vor.u32 %v3465_v59, %v2747_v60  ;;  %v2715_v55 = vld [vmem:[#allocation2 + $0x398] sm:$0xf0] }
  0x95   :  { %1867 = vmatpush.bf16.msra.mxu1 %v2358_v12  ;;  %v2571_v12 = vld [vmem:[#allocation2 + $0x278] sm:$0xf0]  ;;  %v2515_v59 = vld [vmem:[#allocation2 + $0x208] sm:$0xf0] }
  0x96   :  { %1881 = vmatpush.bf16.msra.mxu2 %v2422_v13  ;;  %v3437_v13 = vld [vmem:[#allocation2 + $0x2f4] sm:$0xf] }
  0x97   :  { %1895 = vmatpush.bf16.msra.mxu3 %v2486_v18  ;;  %v2699_v18 = vld [vmem:[#allocation2 + $0x378] sm:$0xf0] }
  0x98   :  { %1854 = vmatpush.bf16.msra.mxu0 %v2286_v24  ;;  %v2574_v24 = vor.u32 %v3421_v11, %v2571_v12  ;;  %v2539_v11 = vld [vmem:[#allocation2 + $0x238] sm:$0xf0]  ;;  %v3429_v12 = vld [vmem:[#allocation2 + $0x2b4] sm:$0xf] }
  0x99   :  { %1868 = vmatpush.bf16.msra.mxu1 %v2350_v25  ;;  %v2638_v25 = vor.u32 %v3437_v13, %v2635_v15  ;;  %v3445_v15 = vld [vmem:[#allocation2 + $0x334] sm:$0xf] }
  0x9a   :  { %1882 = vmatpush.bf16.msra.mxu2 %v2414_v26  ;;  %v2702_v26 = vor.u32 %v3453_v16, %v2699_v18  ;;  %v2667_v16 = vld [vmem:[#allocation2 + $0x338] sm:$0xf0]  ;;  %v3461_v18 = vld [vmem:[#allocation2 + $0x3b4] sm:$0xf] }
  0x9b   :  { %1896 = vmatpush.bf16.msra.mxu3 %v2478_v30  ;;  %v2766_v30 = vor.u32 %v3469_v21, %v2763_v22  ;;  %v2670_v22 = vor.u32 %v3445_v15, %v2667_v16 }
  0x9c   :  { %1855 = vmatpush.bf16.msra.mxu0 %v2278_v48  ;;  %v2566_v48 = vor.u32 %v3419_v27, %v2563_v28  ;;  %v2595_v27 = vld [vmem:[#allocation2 + $0x2a8] sm:$0xf0]  ;;  %v3443_v28 = vld [vmem:[#allocation2 + $0x324] sm:$0xf] }
  0x9d   :  { %1869 = vmatpush.bf16.msra.mxu1 %v2342_v49  ;;  %v2630_v49 = vor.u32 %v3435_v29, %v2627_v33  ;;  %v2659_v29 = vld [vmem:[#allocation2 + $0x328] sm:$0xf0] }
  0x9e   :  { %1883 = vmatpush.bf16.msra.mxu2 %v2406_v50  ;;  %v2694_v50 = vor.u32 %v3451_v34, %v2691_v37  ;;  %v2723_v33 = vld [vmem:[#allocation2 + $0x3a8] sm:$0xf0] }
  0x9f   :  { %1897 = vmatpush.bf16.msra.mxu3 %v2470_v54  ;;  %v2758_v54 = vor.u32 %v3467_v42, %v2755_v45  ;;  %v2662_v42 = vor.u32 %v3443_v28, %v2659_v29  ;;  %v3409_v45 = vld [vmem:[#allocation2 + $0x214] sm:$0xf] }
  0xa0   :  { %1856 = vmatpush.bf16.msra.mxu0 %v2270_v61  ;;  %v2558_v61 = vor.u32 %v3417_v51, %v2555_v52  ;;  %v2587_v51 = vld [vmem:[#allocation2 + $0x298] sm:$0xf0]  ;;  %v3441_v52 = vld [vmem:[#allocation2 + $0x314] sm:$0xf] }
  0xa1   :  { %1870 = vmatpush.bf16.msra.mxu1 %v2334_v0  ;;  %v3415_v0 = vld [vmem:[#allocation2 + $0x244] sm:$0xf] }
  0xa2   :  { %1884 = vmatpush.bf16.msra.mxu2 %v2398_v2  ;;  %v2547_v2 = vld [vmem:[#allocation2 + $0x248] sm:$0xf0] }
  0xa3   :  { %1898 = vmatpush.bf16.msra.mxu3 %v2462_v6  ;;  %v2675_v6 = vld [vmem:[#allocation2 + $0x348] sm:$0xf0] }
  0xa4   :  { %1857 = vmatpush.bf16.msra.mxu0 %v2262_v14  ;;  %v2603_v14 = vld [vmem:[#allocation2 + $0x2b8] sm:$0xf0] }
  0xa5   :  { %1871 = vmatpush.bf16.msra.mxu1 %v2326_v19  ;;  %v2731_v19 = vld [vmem:[#allocation2 + $0x3b8] sm:$0xf0]  ;;  %v2606_v21 = vor.u32 %v3429_v12, %v2603_v14  ;;  %v3533_v12 = vld [vmem:[#allocation2 + $0x5f4] sm:$0xf] }
  0xa6   :  { %1885 = vmatpush.bf16.msra.mxu2 %v2390_v20  ;;  %v2542_v20 = vor.u32 %v3413_v9, %v2539_v11 }
  0xa7   :  { %1899 = vmatpush.bf16.msra.mxu3 %v2454_v23  ;;  %1858 = vmatmul.bf16.vlgmr.msra.gmra.mxu0 %v3690_v58  ;;  %v2611_v58 = vld [vmem:[#allocation2 + $0x2c8] sm:$0xf0]  ;;  %v3411_v23 = vld [vmem:[#allocation2 + $0x224] sm:$0xf] }
  0xa8   :  { %1906 = vmatpush.bf16.msrb.mxu0 %v2574_v24  ;;  %1872 = vmatmul.bf16.vlgmr.msra.gmra.mxu1 %v3708_v10  ;;  %v2550_v10 = vor.u32 %v3415_v0, %v2547_v2  ;;  %v2614_v8 = vor.u32 %v3431_v3, %v2611_v58  ;;  %v2531_v24 = vld [vmem:[#allocation2 + $0x228] sm:$0xf0]  ;;  %v3439_v0 = vld [vmem:[#allocation2 + $0x304] sm:$0xf] }
  0xa9   :  { %1920 = vmatpush.bf16.msrb.mxu1 %v2638_v25  ;;  %1886 = vmatmul.bf16.vlgmr.msra.gmra.mxu2 %v3695_v1  ;;  %v2739_v1 = vld [vmem:[#allocation2 + $0x3c8] sm:$0xf0]  ;;  %v3427_v25 = vld [vmem:[#allocation2 + $0x2a4] sm:$0xf]  ;;  %v2534_v34 = vor.u32 %v3411_v23, %v2531_v24 }
  0xaa   :  { %1934 = vmatpush.bf16.msrb.mxu2 %v2702_v26  ;;  %1900 = vmatmul.bf16.vlgmr.msra.gmra.mxu3 %v3713_v17  ;;  %v2678_v17 = vor.u32 %v3447_v5, %v2675_v6  ;;  %v2742_v13 = vor.u32 %v3463_v7, %v2739_v1  ;;  %v2734_v26 = vor.u32 %v3461_v18, %v2731_v19  ;;  %v2643_v3 = vld [vmem:[#allocation2 + $0x308] sm:$0xf0]  ;;  %v3485_v5 = vld [vmem:[#allocation2 + $0x474] sm:$0xf]  ;;  %v2827_v6 = vld [vmem:[#allocation2 + $0x478] sm:$0xf0] }
  0xab   :  { %1948 = vmatpush.bf16.msrb.mxu3 %v2766_v30  ;;  %v3459_v30 = vld [vmem:[#allocation2 + $0x3a4] sm:$0xf]  ;;  %v2598_v37 = vor.u32 %v3427_v25, %v2595_v27  ;;  %v2707_v58 = vld [vmem:[#allocation2 + $0x388] sm:$0xf0]  ;;  %v3501_v7 = vld [vmem:[#allocation2 + $0x4f4] sm:$0xf]  ;;  %v2518_v1 = vor.u32 %v3407_v57, %v2515_v59  ;;  %v2646_v11 = vor.u32 %v3439_v0, %v2643_v3  ;;  %v2830_v15 = vor.u32 %v3485_v5, %v2827_v6 }
  0xac   :  { %1907 = vmatpush.bf16.msrb.mxu0 %v2566_v48  ;;  %v2523_v48 = vld [vmem:[#allocation2 + $0x218] sm:$0xf0]  ;;  %v3483_v19 = vld [vmem:[#allocation2 + $0x464] sm:$0xf]  ;;  %v2883_v23 = vld [vmem:[#allocation2 + $0x4e8] sm:$0xf0] }
  0xad   :  { %1921 = vmatpush.bf16.msrb.mxu1 %v2630_v49  ;;  %v3425_v49 = vld [vmem:[#allocation2 + $0x294] sm:$0xf]  ;;  %v2526_v56 = vor.u32 %v3409_v45, %v2523_v48  ;;  %v3515_v24 = vld [vmem:[#allocation2 + $0x564] sm:$0xf]  ;;  %v2947_v25 = vld [vmem:[#allocation2 + $0x568] sm:$0xf0] }
  0xae   :  { %1935 = vmatpush.bf16.msrb.mxu2 %v2694_v50  ;;  %v2726_v50 = vor.u32 %v3459_v30, %v2723_v33  ;;  %v2590_v60 = vor.u32 %v3425_v49, %v2587_v51  ;;  %v3011_v27 = vld [vmem:[#allocation2 + $0x5e8] sm:$0xf0]  ;;  %v2950_v30 = vor.u32 %v3515_v24, %v2947_v25  ;;  %v3481_v33 = vld [vmem:[#allocation2 + $0x454] sm:$0xf]  ;;  %v2875_v45 = vld [vmem:[#allocation2 + $0x4d8] sm:$0xf0] }
  0xaf   :  { %1949 = vmatpush.bf16.msrb.mxu3 %v2758_v54  ;;  %v3457_v54 = vld [vmem:[#allocation2 + $0x394] sm:$0xf]  ;;  %v2939_v49 = vld [vmem:[#allocation2 + $0x558] sm:$0xf0]  ;;  %v2867_v59 = vld [vmem:[#allocation2 + $0x4c8] sm:$0xf0] }
  0xb0   :  { %1908 = vmatpush.bf16.msrb.mxu0 %v2558_v61  ;;  %v2654_v61 = vor.u32 %v3441_v52, %v2651_v53  ;;  %v2718_v2 = vor.u32 %v3457_v54, %v2715_v55  ;;  %v3513_v48 = vld [vmem:[#allocation2 + $0x554] sm:$0xf]  ;;  %v3003_v51 = vld [vmem:[#allocation2 + $0x5d8] sm:$0xf0]  ;;  %v3479_v55 = vld [vmem:[#allocation2 + $0x444] sm:$0xf] }
  0xb1   :  { %1922 = vmatpush.bf16.msrb.mxu1 %v2622_v62  ;;  %v3423_v62 = vld [vmem:[#allocation2 + $0x284] sm:$0xf]  ;;  %v2942_v54 = vor.u32 %v3513_v48, %v2939_v49  ;;  %v3477_v0 = vld [vmem:[#allocation2 + $0x434] sm:$0xf]  ;;  %v2923_v6 = vld [vmem:[#allocation2 + $0x538] sm:$0xf0] }
  0xb2   :  { %1936 = vmatpush.bf16.msrb.mxu2 %v2686_v63  ;;  %v2579_v63 = vld [vmem:[#allocation2 + $0x288] sm:$0xf0]  ;;  %v3493_v3 = vld [vmem:[#allocation2 + $0x4b4] sm:$0xf]  ;;  %v3844_v48 = vld [vmem:[%s3950_s2] sm:$0x3] }
  0xb3   :  { %1950 = vmatpush.bf16.msrb.mxu3 %v2750_v4  ;;  %v3455_v4 = vld [vmem:[#allocation2 + $0x384] sm:$0xf]  ;;  %v2582_v9 = vor.u32 %v3423_v62, %v2579_v63  ;;  %v3509_v5 = vld [vmem:[#allocation2 + $0x534] sm:$0xf] }
  0xb4   :  { %1909 = vmatpush.bf16.msrb.mxu0 %v2550_v10  ;;  %v2891_v10 = vld [vmem:[#allocation2 + $0x4f8] sm:$0xf0]  ;;  %v2710_v14 = vor.u32 %v3455_v4, %v2707_v58  ;;  %v3473_v25 = vld [vmem:[#allocation2 + $0x414] sm:$0xf] }
  0xb5   :  { %1923 = vmatpush.bf16.msrb.mxu1 %v2614_v8  ;;  %v3517_v8 = vld [vmem:[#allocation2 + $0x574] sm:$0xf]  ;;  %v2894_v16 = vor.u32 %v3501_v7, %v2891_v10  ;;  %v2859_v58 = vld [vmem:[#allocation2 + $0x4b8] sm:$0xf0]  ;;  %v3833_v7 = vpop.f32.mrf.mxu0 }
  0xb6   :  { %1937 = vmatpush.bf16.msrb.mxu2 %v2678_v17  ;;  %v2955_v17 = vld [vmem:[#allocation2 + $0x578] sm:$0xf0] }
  0xb7   :  { %1951 = vmatpush.bf16.msrb.mxu3 %v2742_v13  ;;  %v3019_v13 = vld [vmem:[#allocation2 + $0x5f8] sm:$0xf0]  ;;  %v2958_v18 = vor.u32 %v3517_v8, %v2955_v17  ;;  %v3835_v8 = vpop.f32.mrf.mxu1 }
  0xb8   :  { %1910 = vmatpush.bf16.msrb.mxu0 %v2542_v20  ;;  %v2819_v20 = vld [vmem:[#allocation2 + $0x468] sm:$0xf0]  ;;  %v2987_v10 = vld [vmem:[#allocation2 + $0x5b8] sm:$0xf0] }
  0xb9   :  { %1924 = vmatpush.bf16.msrb.mxu1 %v2606_v21  ;;  %v3499_v21 = vld [vmem:[#allocation2 + $0x4e4] sm:$0xf]  ;;  %v2822_v28 = vor.u32 %v3483_v19, %v2819_v20  ;;  %v2915_v19 = vld [vmem:[#allocation2 + $0x528] sm:$0xf0] }
  0xba   :  { %1938 = vmatpush.bf16.msrb.mxu2 %v2670_v22  ;;  %v3022_v22 = vor.u32 %v3533_v12, %v3019_v13  ;;  %v2886_v29 = vor.u32 %v3499_v21, %v2883_v23  ;;  %v3475_v12 = vld [vmem:[#allocation2 + $0x424] sm:$0xf]  ;;  %v2787_v13 = vld [vmem:[#allocation2 + $0x428] sm:$0xf0] }
  0xbb   :  { %1952 = vmatpush.bf16.msrb.mxu3 %v2734_v26  ;;  %v3531_v26 = vld [vmem:[#allocation2 + $0x5e4] sm:$0xf]  ;;  %v2979_v21 = vld [vmem:[#allocation2 + $0x5a8] sm:$0xf0] }
  0xbc   :  { %1911 = vmatpush.bf16.msrb.mxu0 %v2534_v34  ;;  %v2811_v34 = vld [vmem:[#allocation2 + $0x458] sm:$0xf0]  ;;  %v3523_v20 = vld [vmem:[#allocation2 + $0x5a4] sm:$0xf] }
  0xbd   :  { %1925 = vmatpush.bf16.msrb.mxu1 %v2598_v37  ;;  %v3497_v37 = vld [vmem:[#allocation2 + $0x4d4] sm:$0xf]  ;;  %v2814_v52 = vor.u32 %v3481_v33, %v2811_v34  ;;  %v2907_v34 = vld [vmem:[#allocation2 + $0x518] sm:$0xf0] }
  0xbe   :  { %1939 = vmatpush.bf16.msrb.mxu2 %v2662_v42  ;;  %v3014_v42 = vor.u32 %v3531_v26, %v3011_v27  ;;  %v2878_v53 = vor.u32 %v3497_v37, %v2875_v45  ;;  %v2779_v26 = vld [vmem:[#allocation2 + $0x418] sm:$0xf0]  ;;  %v3489_v27 = vld [vmem:[#allocation2 + $0x494] sm:$0xf]  ;;  %v3839_v37 = vpop.f32.mrf.mxu3 }
  0xbf   :  { %1953 = vmatpush.bf16.msrb.mxu3 %v2726_v50  ;;  %v3529_v50 = vld [vmem:[#allocation2 + $0x5d4] sm:$0xf]  ;;  %v2971_v45 = vld [vmem:[#allocation2 + $0x598] sm:$0xf0]  ;;  %v2782_v49 = vor.u32 %v3473_v25, %v2779_v26 }
  0xc0   :  { %1912 = vmatpush.bf16.msrb.mxu0 %v2526_v56  ;;  %v3495_v56 = vld [vmem:[#allocation2 + $0x4c4] sm:$0xf]  ;;  %v3006_v57 = vor.u32 %v3529_v50, %v3003_v51  ;;  %v3505_v33 = vld [vmem:[#allocation2 + $0x514] sm:$0xf]  ;;  %v2771_v51 = vld [vmem:[#allocation2 + $0x408] sm:$0xf0] }
  0xc1   :  { %1926 = vmatpush.bf16.msrb.mxu1 %v2590_v60  ;;  %v3511_v60 = vld [vmem:[#allocation2 + $0x544] sm:$0xf] }
  0xc2   :  { %1940 = vmatpush.bf16.msrb.mxu2 %v2654_v61  ;;  %v3527_v61 = vld [vmem:[#allocation2 + $0x5c4] sm:$0xf] }
  0xc3   :  { %1954 = vmatpush.bf16.msrb.mxu3 %v2718_v2  ;;  %v2795_v2 = vld [vmem:[#allocation2 + $0x438] sm:$0xf0]  ;;  %v3471_v50 = vld [vmem:[#allocation2 + $0x404] sm:$0xf] }
  0xc4   :  { %1913 = vmatpush.bf16.msrb.mxu0 %v2518_v1  ;;  %v3525_v1 = vld [vmem:[#allocation2 + $0x5b4] sm:$0xf]  ;;  %v2798_v17 = vor.u32 %v3477_v0, %v2795_v2  ;;  %v3147_v0 = vld [vmem:[#allocation2 + $0x6f8] sm:$0xf0] }
  0xc5   :  { %1927 = vmatpush.bf16.msrb.mxu1 %v2582_v9  ;;  %v2862_v9 = vor.u32 %v3493_v3, %v2859_v58  ;;  %v3581_v2 = vld [vmem:[#allocation2 + $0x774] sm:$0xf]  ;;  %v3211_v3 = vld [vmem:[#allocation2 + $0x778] sm:$0xf0] }
  0xc6   :  { %1941 = vmatpush.bf16.msrb.mxu2 %v2646_v11  ;;  %v2926_v11 = vor.u32 %v3509_v5, %v2923_v6  ;;  %v3597_v6 = vld [vmem:[#allocation2 + $0x7f4] sm:$0xf] }
  0xc7   :  { %1955 = vmatpush.bf16.msrb.mxu3 %v2710_v14  ;;  %1914 = vmatmul.bf16.vlgmr.msrb.gmra.mxu0 %v3741_v39  ;;  %v2803_v39 = vld [vmem:[#allocation2 + $0x448] sm:$0xf0]  ;;  %v3491_v14 = vld [vmem:[#allocation2 + $0x4a4] sm:$0xf] }
  0xc8   :  { %1962 = vmatpush.bf16.msra.mxu0 %v2830_v15  ;;  %1928 = vmatmul.bf16.vlgmr.msrb.gmra.mxu1 %v3745_v44  ;;  %v2995_v44 = vld [vmem:[#allocation2 + $0x5c8] sm:$0xf0]  ;;  %v2806_v62 = vor.u32 %v3479_v55, %v2803_v39  ;;  %v2990_v15 = vor.u32 %v3525_v1, %v2987_v10  ;;  %v3487_v55 = vld [vmem:[#allocation2 + $0x484] sm:$0xf]  ;;  %v3275_v1 = vld [vmem:[#allocation2 + $0x7f8] sm:$0xf0] }
  0xc9   :  { %1976 = vmatpush.bf16.msra.mxu1 %v2894_v16  ;;  %1942 = vmatmul.bf16.vlgmr.msrb.gmra.mxu2 %v3743_v43  ;;  %v2931_v43 = vld [vmem:[#allocation2 + $0x548] sm:$0xf0]  ;;  %v2998_v4 = vor.u32 %v3527_v61, %v2995_v44  ;;  %v3549_v44 = vld [vmem:[#allocation2 + $0x674] sm:$0xf] }
  0xca   :  { %1990 = vmatpush.bf16.msra.mxu2 %v2958_v18  ;;  %1956 = vmatmul.bf16.vlgmr.msrb.gmra.mxu3 %v3747_v47  ;;  %v2870_v47 = vor.u32 %v3495_v56, %v2867_v59  ;;  %v2934_v63 = vor.u32 %v3511_v60, %v2931_v43  ;;  %v2851_v16 = vld [vmem:[#allocation2 + $0x4a8] sm:$0xf0]  ;;  %v3507_v18 = vld [vmem:[#allocation2 + $0x524] sm:$0xf] }
  0xcb   :  { %2004 = vmatpush.bf16.msra.mxu3 %v3022_v22  ;;  %v2790_v22 = vor.u32 %v3475_v12, %v2787_v13  ;;  %v2854_v23 = vor.u32 %v3491_v14, %v2851_v16  ;;  %v2918_v24 = vor.u32 %v3507_v18, %v2915_v19  ;;  %v2835_v39 = vld [vmem:[#allocation2 + $0x488] sm:$0xf0]  ;;  %v3503_v56 = vld [vmem:[#allocation2 + $0x504] sm:$0xf]  ;;  %v3278_v16 = vor.u32 %v3597_v6, %v3275_v1  ;;  %v3557_v6 = vld [vmem:[#allocation2 + $0x6b4] sm:$0xf] }
  0xcc   :  { %1963 = vmatpush.bf16.msra.mxu0 %v2822_v28  ;;  %v3837_v28 = vpop.f32.mrf.mxu2  ;;  %v2899_v60 = vld [vmem:[#allocation2 + $0x508] sm:$0xf0]  ;;  %v3519_v43 = vld [vmem:[#allocation2 + $0x584] sm:$0xf]  ;;  %v2838_v58 = vor.u32 %v3487_v55, %v2835_v39  ;;  %v3115_v1 = vld [vmem:[#allocation2 + $0x6b8] sm:$0xf0] }
  0xcd   :  { %1977 = vmatpush.bf16.msra.mxu1 %v2886_v29  ;;  %v2982_v29 = vor.u32 %v3523_v20, %v2979_v21  ;;  %v2963_v61 = vld [vmem:[#allocation2 + $0x588] sm:$0xf0]  ;;  %v2902_v5 = vor.u32 %v3503_v56, %v2899_v60  ;;  %v3547_v12 = vld [vmem:[#allocation2 + $0x664] sm:$0xf] }
  0xce   :  { %1991 = vmatpush.bf16.msra.mxu2 %v2950_v30  ;;  %v2843_v30 = vld [vmem:[#allocation2 + $0x498] sm:$0xf0]  ;;  %v2966_v10 = vor.u32 %v3519_v43, %v2963_v61  ;;  %v3075_v13 = vld [vmem:[#allocation2 + $0x668] sm:$0xf0]  ;;  %v3563_v14 = vld [vmem:[#allocation2 + $0x6e4] sm:$0xf] }
  0xcf   :  { %2005 = vmatpush.bf16.msra.mxu3 %v3014_v42  ;;  %v3521_v42 = vld [vmem:[#allocation2 + $0x594] sm:$0xf]  ;;  %v3139_v18 = vld [vmem:[#allocation2 + $0x6e8] sm:$0xf0]  ;;  %v3579_v19 = vld [vmem:[#allocation2 + $0x764] sm:$0xf]  ;;  %v3078_v25 = vor.u32 %v3547_v12, %v3075_v13 }
  0xd0   :  { %1964 = vmatpush.bf16.msra.mxu0 %v2814_v52  ;;  %v3846_v52 = vpop.f32.mrf.mxu0  ;;  %v2974_v59 = vor.u32 %v3521_v42, %v2971_v45  ;;  %v3203_v20 = vld [vmem:[#allocation2 + $0x768] sm:$0xf0]  ;;  %v3131_v45 = vld [vmem:[#allocation2 + $0x6d8] sm:$0xf0]  ;;  %v3543_v56 = vld [vmem:[#allocation2 + $0x644] sm:$0xf] }
  0xd1   :  { %1978 = vmatpush.bf16.msra.mxu1 %v2878_v53  ;;  %v2846_v53 = vor.u32 %v3489_v27, %v2843_v30  ;;  %v3142_v27 = vor.u32 %v3563_v14, %v3139_v18  ;;  %v3545_v30 = vld [vmem:[#allocation2 + $0x654] sm:$0xf]  ;;  %v3559_v60 = vld [vmem:[#allocation2 + $0x6c4] sm:$0xf]  ;;  %v3243_v12 = vld [vmem:[#allocation2 + $0x7b8] sm:$0xf0] }
  0xd2   :  { %1992 = vmatpush.bf16.msra.mxu2 %v2942_v54  ;;  %v2910_v54 = vor.u32 %v3505_v33, %v2907_v34  ;;  %v3067_v33 = vld [vmem:[#allocation2 + $0x658] sm:$0xf0]  ;;  %v3561_v34 = vld [vmem:[#allocation2 + $0x6d4] sm:$0xf]  ;;  %v3575_v61 = vld [vmem:[#allocation2 + $0x744] sm:$0xf] }
  0xd3   :  { %2006 = vmatpush.bf16.msra.mxu3 %v3006_v57  ;;  %v3848_v57 = vpop.f32.mrf.mxu1  ;;  %v3070_v55 = vor.u32 %v3545_v30, %v3067_v33  ;;  %v3134_v39 = vor.u32 %v3561_v34, %v3131_v45  ;;  %v3235_v30 = vld [vmem:[#allocation2 + $0x7a8] sm:$0xf0]  ;;  %v3537_v45 = vld [vmem:[#allocation2 + $0x614] sm:$0xf] }
  0xd4   :  { %1965 = vmatpush.bf16.msra.mxu0 %v2806_v62  ;;  %v3083_v62 = vld [vmem:[#allocation2 + $0x678] sm:$0xf0] }
  0xd5   :  { %1979 = vmatpush.bf16.msra.mxu1 %v2870_v47  ;;  %v3565_v47 = vld [vmem:[#allocation2 + $0x6f4] sm:$0xf] }
  0xd6   :  { %1993 = vmatpush.bf16.msra.mxu2 %v2934_v63  ;;  %v2774_v63 = vor.u32 %v3471_v50, %v2771_v51  ;;  %v3195_v50 = vld [vmem:[#allocation2 + $0x758] sm:$0xf0] }
  0xd7   :  { %2007 = vmatpush.bf16.msra.mxu3 %v2998_v4  ;;  %v342_v4 = vperm.slane %v3844_v48, 0 }
  0xd8   :  { %1966 = vmatpush.bf16.msra.mxu0 %v2798_v17  ;;  %v3086_v17 = vor.u32 %v3549_v44, %v3083_v62  ;;  %v3858_v26 = vpop.f32.mrf.mxu0  ;;  %v3591_v44 = vld [vmem:[#allocation2 + $0x7c4] sm:$0xf]  ;;  %v3251_v62 = vld [vmem:[#allocation2 + $0x7c8] sm:$0xf0] }
  0xd9   :  { %1980 = vmatpush.bf16.msra.mxu1 %v2862_v9  ;;  %v3150_v9 = vor.u32 %v3565_v47, %v3147_v0  ;;  %v1636_v21 = vadd.f32 %v3833_v7, %v342_v4 }
  0xda   :  { %1994 = vmatpush.bf16.msra.mxu2 %v2926_v11  ;;  %v3214_v11 = vor.u32 %v3581_v2, %v3211_v3 }
  0xdb   :  { %2008 = vmatpush.bf16.msra.mxu3 %v2990_v15  ;;  %v3851_v15 = vpop.f32.mrf.mxu2  ;;  %v3860_v42 = vpop.f32.mrf.mxu1  ;;  %v1650_v51 = vadd.f32 %v3835_v8, %v1636_v21  ;;  %v3123_v8 = vld [vmem:[#allocation2 + $0x6c8] sm:$0xf0]  ;;  %v3555_v21 = vld [vmem:[#allocation2 + $0x6a4] sm:$0xf] }
  0xdc   :  { %1967 = vmatpush.bf16.msra.mxu0 %v2790_v22  ;;  %v3856_v22 = vpop.f32.mrf.mxu3  ;;  %v3126_v2 = vor.u32 %v3559_v60, %v3123_v8  ;;  %v3227_v60 = vld [vmem:[#allocation2 + $0x798] sm:$0xf0] }
  0xdd   :  { %1981 = vmatpush.bf16.msra.mxu1 %v2854_v23  ;;  %v3595_v23 = vld [vmem:[#allocation2 + $0x7e4] sm:$0xf] }
  0xde   :  { %1995 = vmatpush.bf16.msra.mxu2 %v2918_v24  ;;  %v3267_v24 = vld [vmem:[#allocation2 + $0x7e8] sm:$0xf0] }
  0xdf   :  { %2009 = vmatpush.bf16.msra.mxu3 %v2982_v29  ;;  %v3206_v29 = vor.u32 %v3579_v19, %v3203_v20  ;;  %v3270_v7 = vor.u32 %v3595_v23, %v3267_v24  ;;  %v3539_v19 = vld [vmem:[#allocation2 + $0x624] sm:$0xf]  ;;  %v3043_v20 = vld [vmem:[#allocation2 + $0x628] sm:$0xf0] }
  0xe0   :  { %1968 = vmatpush.bf16.msra.mxu0 %v2782_v49  ;;  %v3577_v49 = vld [vmem:[#allocation2 + $0x754] sm:$0xf]  ;;  %v3107_v24 = vld [vmem:[#allocation2 + $0x6a8] sm:$0xf0]  ;;  %v3046_v33 = vor.u32 %v3539_v19, %v3043_v20 }
  0xe1   :  { %1982 = vmatpush.bf16.msra.mxu1 %v2846_v53  ;;  %v3593_v53 = vld [vmem:[#allocation2 + $0x7d4] sm:$0xf]  ;;  %v3110_v34 = vor.u32 %v3555_v21, %v3107_v24  ;;  %v3604_v19 = vld [vmem:[%s3951_s3 + $0x28] sm:$0xff] }
  0xe2   :  { %1996 = vmatpush.bf16.msra.mxu2 %v2910_v54  ;;  %v3259_v54 = vld [vmem:[#allocation2 + $0x7d8] sm:$0xf0] }
  0xe3   :  { %2010 = vmatpush.bf16.msra.mxu3 %v2974_v59  ;;  %v3059_v59 = vld [vmem:[#allocation2 + $0x648] sm:$0xf0]  ;;  %v3262_v43 = vor.u32 %v3593_v53, %v3259_v54  ;;  %v3871_v47 = vpop.f32.mrf.mxu2  ;;  %v3877_v13 = vpop.f32.mrf.mxu1  ;;  %v3099_v54 = vld [vmem:[#allocation2 + $0x698] sm:$0xf0] }
  0xe4   :  { %1969 = vmatpush.bf16.msra.mxu0 %v2774_v63  ;;  %v3062_v63 = vor.u32 %v3543_v56, %v3059_v59  ;;  %v3873_v0 = vpop.f32.mrf.mxu3  ;;  %v3585_v59 = vld [vmem:[#allocation2 + $0x794] sm:$0xf] }
  0xe5   :  { %1983 = vmatpush.bf16.msra.mxu1 %v2838_v58  ;;  %v3541_v58 = vld [vmem:[#allocation2 + $0x634] sm:$0xf] }
  0xe6   :  { %1997 = vmatpush.bf16.msra.mxu2 %v2902_v5  ;;  %v3051_v5 = vld [vmem:[#allocation2 + $0x638] sm:$0xf0] }
  0xe7   :  { %2011 = vmatpush.bf16.msra.mxu3 %v2966_v10  ;;  %1970 = vmatmul.bf16.vlgmr.msra.gmra.mxu0 %v3777_v31  ;;  %v3198_v31 = vor.u32 %v3577_v49, %v3195_v50  ;;  %v3573_v10 = vld [vmem:[#allocation2 + $0x734] sm:$0xf]  ;;  %v3054_v14 = vor.u32 %v3541_v58, %v3051_v5  ;;  %v3035_v49 = vld [vmem:[#allocation2 + $0x618] sm:$0xf0]  ;;  %v3583_v58 = vld [vmem:[#allocation2 + $0x784] sm:$0xf] }
  0xe8   :  { %2018 = vmatpush.bf16.msrb.mxu0 %v3086_v17  ;;  %1984 = vmatmul.bf16.vlgmr.msra.gmra.mxu1 %v3781_v36  ;;  %v1664_v36 = vadd.f32 %v3837_v28, %v1650_v51  ;;  %v3254_v28 = vor.u32 %v3591_v44, %v3251_v62  ;;  %v3553_v50 = vld [vmem:[#allocation2 + $0x694] sm:$0xf]  ;;  %v3038_v8 = vor.u32 %v3537_v45, %v3035_v49  ;;  %v3551_v44 = vld [vmem:[#allocation2 + $0x684] sm:$0xf]  ;;  %v3219_v5 = vld [vmem:[#allocation2 + $0x788] sm:$0xf0] }
  0xe9   :  { %2032 = vmatpush.bf16.msrb.mxu1 %v3150_v9  ;;  %1998 = vmatmul.bf16.vlgmr.msra.gmra.mxu2 %v3779_v35  ;;  %v3187_v35 = vld [vmem:[#allocation2 + $0x748] sm:$0xf0]  ;;  %v1693_v9 = vpop.f32.mrf.mxu0  ;;  %v3230_v62 = vor.u32 %v3585_v59, %v3227_v60  ;;  %v3601_v45 = vld [vmem:[%s3951_s3 + $0x10] sm:$0xff] }
  0xea   :  { %2046 = vmatpush.bf16.msrb.mxu2 %v3214_v11  ;;  %2012 = vmatmul.bf16.vlgmr.msra.gmra.mxu3 %v3783_v40  ;;  %v1638_v40 = vadd.f32 %v3846_v52, %v342_v4  ;;  %v3190_v3 = vor.u32 %v3575_v61, %v3187_v35  ;;  %v3179_v52 = vld [vmem:[#allocation2 + $0x738] sm:$0xf0]  ;;  %v1678_v4 = vadd.f32 %v3839_v37, %v1664_v36  ;;  %v3589_v11 = vld [vmem:[#allocation2 + $0x7b4] sm:$0xf]  ;;  %v3571_v37 = vld [vmem:[#allocation2 + $0x724] sm:$0xf] }
  0xeb   :  { %2060 = vmatpush.bf16.msrb.mxu3 %v3278_v16  ;;  %v3118_v16 = vor.u32 %v3557_v6, %v3115_v1  ;;  %v3182_v18 = vor.u32 %v3573_v10, %v3179_v52  ;;  %v3246_v23 = vor.u32 %v3589_v11, %v3243_v12  ;;  %v1721_v51 = vpop.f32.mrf.mxu2  ;;  %v3102_v61 = vor.u32 %v3553_v50, %v3099_v54  ;;  %v3535_v36 = vld [vmem:[#allocation2 + $0x604] sm:$0xf] }
  0xec   :  { %2019 = vmatpush.bf16.msrb.mxu0 %v3078_v25  ;;  %v1652_v17 = vadd.f32 %v3848_v57, %v1638_v40  ;;  %v3171_v25 = vld [vmem:[#allocation2 + $0x728] sm:$0xf0]  ;;  %v3222_v52 = vor.u32 %v3583_v58, %v3219_v5 }
  0xed   :  { %2033 = vmatpush.bf16.msrb.mxu1 %v3142_v27  ;;  %v1692_v27 = vadd.f32 %v3858_v26, %v1678_v4  ;;  %v3027_v40 = vld [vmem:[#allocation2 + $0x608] sm:$0xf0]  ;;  %v3606_v4 = vld [vmem:[%s3951_s3 + $0x38] sm:$0xff] }
  0xee   :  { %2047 = vmatpush.bf16.msrb.mxu2 %v3206_v29  ;;  %v1666_v57 = vadd.f32 %v3851_v15, %v1652_v17  ;;  %v3587_v29 = vld [vmem:[#allocation2 + $0x7a4] sm:$0xf]  ;;  %v3030_v6 = vor.u32 %v3535_v36, %v3027_v40 }
  0xef   :  { %2061 = vmatpush.bf16.msrb.mxu3 %v3270_v7  ;;  %v3174_v7 = vor.u32 %v3571_v37, %v3171_v25  ;;  %v3238_v53 = vor.u32 %v3587_v29, %v3235_v30  ;;  %v1706_v26 = vadd.f32 %v3860_v42, %v1692_v27  ;;  %v3602_v27 = vld [vmem:[%s3951_s3 + $0x18] sm:$0xff] }
  0xf0   :  { %2020 = vmatpush.bf16.msrb.mxu0 %v3070_v55  ;;  %v3569_v55 = vld [vmem:[#allocation2 + $0x714] sm:$0xf]  ;;  %v1680_v15 = vadd.f32 %v3856_v22, %v1666_v57  ;;  %v3567_v22 = vld [vmem:[#allocation2 + $0x704] sm:$0xf] }
  0xf1   :  { %2034 = vmatpush.bf16.msrb.mxu1 %v3134_v39  ;;  %v3163_v39 = vld [vmem:[#allocation2 + $0x718] sm:$0xf0]  ;;  %v1747_v56 = vpop.f32.mrf.mxu0  ;;  %v1720_v42 = vadd.f32 %v3871_v47, %v1706_v26 }
  0xf2   :  { %2048 = vmatpush.bf16.msrb.mxu2 %v3198_v31  ;;  %v1735_v31 = vpop.f32.mrf.mxu3  ;;  %v3166_v35 = vor.u32 %v3569_v55, %v3163_v39 }
  0xf3   :  { %2062 = vmatpush.bf16.msrb.mxu3 %v3262_v43  ;;  %v1761_v43 = vpop.f32.mrf.mxu1  ;;  %v1775_v10 = vpop.f32.mrf.mxu2  ;;  %v1734_v17 = vadd.f32 %v3873_v0, %v1720_v42  ;;  %v3613_v42 = vld [vmem:[%s3951_s3 + $0x70] sm:$0xff] }
  0xf4   :  { %2021 = vmatpush.bf16.msrb.mxu0 %v3062_v63  ;;  %v3091_v63 = vld [vmem:[#allocation2 + $0x688] sm:$0xf0] }
  0xf5   :  { %2035 = vmatpush.bf16.msrb.mxu1 %v3126_v2  ;;  %v3155_v2 = vld [vmem:[#allocation2 + $0x708] sm:$0xf0]  ;;  %v1748_v12 = vadd.f32 %v1747_v56, %v1734_v17 }
  0xf6   :  { %2049 = vmatpush.bf16.msrb.mxu2 %v3190_v3  ;;  %v1694_v3 = vadd.f32 %v1693_v9, %v1680_v15  ;;  %v3158_v1 = vor.u32 %v3567_v22, %v3155_v2  ;;  %v3614_v22 = vld [vmem:[%s3951_s3 + $0x78] sm:$0xff]  ;;  %v343_v2 = vperm.slane %v3844_v48, 1 }
  0xf7   :  { %2063 = vmatpush.bf16.msrb.mxu3 %v3254_v28  ;;  %v3094_v28 = vor.u32 %v3551_v44, %v3091_v63 }
  0xf8   :  { %2022 = vmatpush.bf16.msrb.mxu0 %v3054_v14  ;;  %v1708_v47 = vadd.f32 %v3877_v13, %v1694_v3  ;;  %v1762_v13 = vadd.f32 %v1761_v43, %v1748_v12  ;;  %v3611_v12 = vld [vmem:[%s3951_s3 + $0x60] sm:$0xff] }
  0xf9   :  { %2036 = vmatpush.bf16.msrb.mxu1 %v3118_v16  ;;  %v1749_v14 = vpop.f32.mrf.mxu0 }
  0xfa   :  { %2050 = vmatpush.bf16.msrb.mxu2 %v3182_v18  ;;  %v1789_v9 = vpop.f32.mrf.mxu3  ;;  %v1722_v11 = vadd.f32 %v1721_v51, %v1708_v47  ;;  %v3605_v18 = vld [vmem:[%s3951_s3 + $0x30] sm:$0xff]  ;;  %v1776_v20 = vadd.f32 %v1775_v10, %v1762_v13 }
  0xfb   :  { %2064 = vmatpush.bf16.msrb.mxu3 %v3246_v23  ;;  %v1763_v16 = vpop.f32.mrf.mxu1  ;;  %v1777_v23 = vpop.f32.mrf.mxu2 }
  0xfc   :  { %2023 = vmatpush.bf16.msrb.mxu0 %v3046_v33  ;;  %v1736_v0 = vadd.f32 %v1735_v31, %v1722_v11  ;;  %v3599_v31 = vld [vmem:[%s3951_s3] sm:$0xff] }
  0xfd   :  { %2037 = vmatpush.bf16.msrb.mxu1 %v3110_v34 }
  0xfe   :  { %2051 = vmatpush.bf16.msrb.mxu2 %v3174_v7  ;;  %v1750_v21 = vadd.f32 %v1749_v14, %v1736_v0  ;;  %v3610_v0 = vld [vmem:[%s3951_s3 + $0x58] sm:$0xff] }
  0xff   :  { %2065 = vmatpush.bf16.msrb.mxu3 %v3238_v53  ;;  %v3600_v53 = vld [vmem:[%s3951_s3 + $0x8] sm:$0xff] }
 0x100   :  { %2024 = vmatpush.bf16.msrb.mxu0 %v3038_v8 }
 0x101   :  { %2038 = vmatpush.bf16.msrb.mxu1 %v3102_v61 }
 0x102   :  { %2052 = vmatpush.bf16.msrb.mxu2 %v3166_v35  ;;  %v1791_v24 = vpop.f32.mrf.mxu3 }
 0x103   :  { %2066 = vmatpush.bf16.msrb.mxu3 %v3230_v62 }
 0x104   :  { %2025 = vmatpush.bf16.msrb.mxu0 %v3030_v6  ;;  %v1803_v37 = vpop.f32.mrf.mxu0 }
 0x105   :  { %2039 = vmatpush.bf16.msrb.mxu1 %v3094_v28  ;;  %v1817_v25 = vpop.f32.mrf.mxu1 }
 0x106   :  { %2053 = vmatpush.bf16.msrb.mxu2 %v3158_v1 }
 0x107   :  { %2067 = vmatpush.bf16.msrb.mxu3 %v3222_v52  ;;  %2026 = vmatmul.bf16.vlgmr.msrb.gmra.mxu0 %v3813_v32  ;;  %v3603_v32 = vld [vmem:[%s3951_s3 + $0x20] sm:$0xff] }
 0x108   :  { %2216 = vmatpush.bf16.msra.mxu0 %v3606_v4  ;;  %2040 = vmatmul.bf16.vlgmr.msrb.gmra.mxu1 %v3817_v41  ;;  %v1764_v41 = vadd.f32 %v1763_v16, %v1750_v21  ;;  %v3612_v4 = vld [vmem:[%s3951_s3 + $0x68] sm:$0xff] }
 0x109   :  { %2054 = vmatmul.bf16.vlgmr.msrb.gmra.mxu2 %v3815_v38  ;;  %v1790_v38 = vadd.f32 %v1789_v9, %v1776_v20  ;;  %2230 = vmatpush.bf16.msra.mxu1 %v3614_v22 }
 0x10a   :  { %2068 = vmatmul.bf16.vlgmr.msrb.gmra.mxu3 %v3819_v46  ;;  %v1778_v57 = vadd.f32 %v1777_v23, %v1764_v41 }
 0x10b   :  { %v1804_v46 = vadd.f32 %v1803_v37, %v1790_v38  ;;  %v3608_v38 = vld [vmem:[%s3951_s3 + $0x48] sm:$0xff] }
 0x10c   :  { %2217 = vmatpush.bf16.msra.mxu0 %v3605_v18  ;;  %v1831_v29 = vpop.f32.mrf.mxu2  ;;  %v1792_v30 = vadd.f32 %v1791_v24, %v1778_v57  ;;  %v1805_v34 = vpop.f32.mrf.mxu0  ;;  %v3609_v24 = vld [vmem:[%s3951_s3 + $0x50] sm:$0xff] }
 0x10d   :  { %v1818_v33 = vadd.f32 %v1817_v25, %v1804_v46  ;;  %v1845_v7 = vpop.f32.mrf.mxu3  ;;  %v1819_v51 = vpop.f32.mrf.mxu1  ;;  %2231 = vmatpush.bf16.msra.mxu1 %v3613_v42 }
 0x10e   :  { %v1806_v50 = vadd.f32 %v1805_v34, %v1792_v30 }
 0x10f   :  { %v1832_v49 = vadd.f32 %v1831_v29, %v1818_v33  ;;  %v3607_v29 = vld [vmem:[%s3951_s3 + $0x40] sm:$0xff] }
 0x110   :  { %2218 = vmatpush.bf16.msra.mxu0 %v3604_v19  ;;  %v1820_v55 = vadd.f32 %v1819_v51, %v1806_v50 }
 0x111   :  { %v1846_v54 = vadd.f32 %v1845_v7, %v1832_v49  ;;  %2232 = vmatpush.bf16.msra.mxu1 %v3612_v4 }
 0x113   :  { %v2074_v56 = vmul.f32 0.2, %v1846_v54 }
 0x114   :  { %2219 = vmatpush.bf16.msra.mxu0 %v3603_v32  ;;  %v1833_v39 = vpop.f32.mrf.mxu2 }
 0x115   :  { %v1834_v15 = vadd.f32 %v1833_v39, %v1820_v55  ;;  %v1847_v26 = vpop.f32.mrf.mxu3  ;;  %v2078_v43 = vmax.f32 %v1846_v54, %v2074_v56  ;;  %2233 = vmatpush.bf16.msra.mxu1 %v3611_v12 }
 0x117   :  { %v1848_v59 = vadd.f32 %v1847_v26, %v1834_v15 }
 0x118   :  { %2220 = vmatpush.bf16.msra.mxu0 %v3602_v27 }
 0x119   :  { %v2076_v60 = vmul.f32 0.2, %v1848_v59  ;;  %2234 = vmatpush.bf16.msra.mxu1 %v3610_v0 }
 0x11b   :  { %v2080_v8 = vmax.f32 %v1848_v59, %v2076_v60 }
 0x11c   :  { %2221 = vmatpush.bf16.msra.mxu0 %v3601_v45 }
 0x11d   :  { %v2082_v61 = vpack.c.bf16 %v2080_v8, %v2078_v43  ;;  %2235 = vmatpush.bf16.msra.mxu1 %v3609_v24 }
 0x120   :  { %2222 = vmatpush.bf16.msra.mxu0 %v3600_v53 }
 0x121   :  { %2236 = vmatpush.bf16.msra.mxu1 %v3608_v38 }
 0x124   :  { %2223 = vmatpush.bf16.msra.mxu0 %v3599_v31  ;;  %v1859_v35 = vpop.f32.mrf.mxu0 }
 0x125   :  { %v1873_v36 = vpop.f32.mrf.mxu1  ;;  %v1860_v58 = vadd.f32 %v1859_v35, %v343_v2  ;;  %2237 = vmatpush.bf16.msra.mxu1 %v3607_v29 }
 0x127   :  { %2224 = vmatmul.bf16.vlgmr.msra.gmra.mxu0 %v2082_v61  ;;  %v1874_v28 = vadd.f32 %v1873_v36, %v1860_v58 }
 0x12c   :  { %v1887_v40 = vpop.f32.mrf.mxu2  ;;  %v1861_v62 = vpop.f32.mrf.mxu0 }
 0x12d   :  { %v1901_v44 = vpop.f32.mrf.mxu3  ;;  %v1875_v63 = vpop.f32.mrf.mxu1  ;;  %v1888_v10 = vadd.f32 %v1887_v40, %v1874_v28  ;;  %v1862_v52 = vadd.f32 %v1861_v62, %v343_v2 }
 0x12f   :  { %v1902_v47 = vadd.f32 %v1901_v44, %v1888_v10  ;;  %v1876_v9 = vadd.f32 %v1875_v63, %v1862_v52  ;;  %v3618_v10 = vld [vmem:[%s3952_s4] ss:$0 sm:$0xff] }
 0x134   :  { %v1889_v3 = vpop.f32.mrf.mxu2 }
 0x135   :  { %v1903_v5 = vpop.f32.mrf.mxu3  ;;  %v1890_v16 = vadd.f32 %v1889_v3, %v1876_v9 }
 0x137   :  { %v1904_v19 = vadd.f32 %v1903_v5, %v1890_v16 }
 0x144   :  { %v1915_v6 = vpop.f32.mrf.mxu0 }
 0x145   :  { %v1929_v1 = vpop.f32.mrf.mxu1  ;;  %v1916_v18 = vadd.f32 %v1915_v6, %v1902_v47 }
 0x147   :  { %v1930_v20 = vadd.f32 %v1929_v1, %v1916_v18 }
 0x14c   :  { %v1943_v17 = vpop.f32.mrf.mxu2  ;;  %v1917_v11 = vpop.f32.mrf.mxu0 }
 0x14d   :  { %v1957_v48 = vpop.f32.mrf.mxu3  ;;  %v1931_v14 = vpop.f32.mrf.mxu1  ;;  %v1944_v25 = vadd.f32 %v1943_v17, %v1930_v20  ;;  %v1918_v32 = vadd.f32 %v1917_v11, %v1904_v19 }
 0x14f   :  { %v1958_v57 = vadd.f32 %v1957_v48, %v1944_v25  ;;  %v1932_v46 = vadd.f32 %v1931_v14, %v1918_v32 }
 0x154   :  { %v1945_v13 = vpop.f32.mrf.mxu2 }
 0x155   :  { %v1959_v21 = vpop.f32.mrf.mxu3  ;;  %v1946_v30 = vadd.f32 %v1945_v13, %v1932_v46 }
 0x157   :  { %v1960_v45 = vadd.f32 %v1959_v21, %v1946_v30 }
 0x164   :  { %v1971_v23 = vpop.f32.mrf.mxu0 }
 0x165   :  { %v1985_v37 = vpop.f32.mrf.mxu1  ;;  %v1972_v33 = vadd.f32 %v1971_v23, %v1958_v57 }
 0x167   :  { %v1986_v49 = vadd.f32 %v1985_v37, %v1972_v33 }
 0x16c   :  { %v1999_v41 = vpop.f32.mrf.mxu2  ;;  %v1973_v34 = vpop.f32.mrf.mxu0 }
 0x16d   :  { %v2013_v27 = vpop.f32.mrf.mxu3  ;;  %v1987_v7 = vpop.f32.mrf.mxu1  ;;  %v2000_v50 = vadd.f32 %v1999_v41, %v1986_v49  ;;  %v1974_v51 = vadd.f32 %v1973_v34, %v1960_v45 }
 0x16f   :  { %v2014_v39 = vadd.f32 %v2013_v27, %v2000_v50  ;;  %v1988_v15 = vadd.f32 %v1987_v7, %v1974_v51 }
 0x174   :  { %v2001_v53 = vpop.f32.mrf.mxu2 }
 0x175   :  { %v2015_v54 = vpop.f32.mrf.mxu3  ;;  %v2002_v31 = vadd.f32 %v2001_v53, %v1988_v15 }
 0x177   :  { %v2016_v60 = vadd.f32 %v2015_v54, %v2002_v31 }
 0x184   :  { %v2027_v55 = vpop.f32.mrf.mxu0 }
 0x185   :  { %v2041_v26 = vpop.f32.mrf.mxu1  ;;  %v2028_v56 = vadd.f32 %v2027_v55, %v2014_v39 }
 0x187   :  { %v2042_v43 = vadd.f32 %v2041_v26, %v2028_v56 }
 0x18c   :  { %v2055_v59 = vpop.f32.mrf.mxu2  ;;  %v2029_v61 = vpop.f32.mrf.mxu0 }
 0x18d   :  { %v2069_v8 = vpop.f32.mrf.mxu3  ;;  %v2056_v35 = vadd.f32 %v2055_v59, %v2042_v43  ;;  %v2030_v36 = vadd.f32 %v2029_v61, %v2016_v60  ;;  %v2043_v40 = vpop.f32.mrf.mxu1 }
 0x18f   :  { %v2070_v44 = vadd.f32 %v2069_v8, %v2056_v35  ;;  %v2044_v62 = vadd.f32 %v2043_v40, %v2030_v36 }
 0x191   :  { %v2075_v42 = vmul.f32 0.2, %v2070_v44 }
 0x193   :  { %v2079_v5 = vmax.f32 %v2070_v44, %v2075_v42 }
 0x194   :  { %v2057_v63 = vpop.f32.mrf.mxu2 }
 0x195   :  { %v2058_v22 = vadd.f32 %v2057_v63, %v2044_v62  ;;  %v2071_v2 = vpop.f32.mrf.mxu3 }
 0x197   :  { %v2072_v3 = vadd.f32 %v2071_v2, %v2058_v22 }
 0x199   :  { %v2077_v58 = vmul.f32 0.2, %v2072_v3 }
 0x19b   :  { %v2081_v6 = vmax.f32 %v2072_v3, %v2077_v58 }
 0x19d   :  { %v2083_v28 = vpack.c.bf16 %v2081_v6, %v2079_v5 }
 0x19f   :  { %2238 = vmatmul.bf16.vlgmr.msra.gmra.mxu1 %v2083_v28 }
 0x1a4   :  { %v2225_v1 = vpop.f32.mrf.mxu0 }
 0x1a5   :  { %v2226_v52 = vadd.f32 %v3618_v10, %v2225_v1 }
 0x1ac   :  { %v2227_v47 = vpop.f32.mrf.mxu0 }
 0x1ad   :  { %v2228_v11 = vadd.f32 %v3618_v10, %v2227_v47 }
 0x21c   :  { %v2239_v4 = vpop.f32.mrf.mxu1 }
 0x21d   :  { %v2240_v17 = vadd.f32 %v2239_v4, %v2226_v52 }
 0x21f   :  { %v2244_v48 = vmul.f32 0.2, %v2240_v17 }
 0x221   :  { %v2246_v9 = vmax.f32 %v2240_v17, %v2244_v48 }
 0x223   :  { %2248 = vst [vmem:[%s3953_s5] sm:$0xff] %v2246_v9 }
 0x224   :  { %v2241_v12 = vpop.f32.mrf.mxu1 }
 0x225   :  { %v2242_v14 = vadd.f32 %v2241_v12, %v2228_v11 }
 0x227   :  { %v2245_v16 = vmul.f32 0.2, %v2242_v14 }
 0x229   :  { %v2247_v18 = vmax.f32 %v2242_v14, %v2245_v16 }
 0x22b   :  { %2249 = vst [vmem:[%s3953_s5 + $0x8] sm:$0xff] %v2247_v18 }
 0x22c   :  { %2254 = vsyncpa [#allocation3], 1 }

</bundles_post_ra>
